<compile_context>
chip_gen: v7x
topology: tpu7x:2x2x1
jax: 0.10.0
libtpu: 0.0.40
codegen_flags: <defaults>
</compile_context>

<pallas_src>
import numpy as np

import jax
import jax.numpy as jnp
from jax.experimental import pallas as pl
from jax.experimental.pallas import tpu as pltpu


def _round_up(x, m):
    return (x + m - 1) // m * m


# ------------------------------- Pallas kernel -------------------------------

def _make_kernel(th, hh, wp, cin, c4):
    """th: output image rows per block; hh: halo image rows; wp = W + 2."""
    tm = th * wp            # main pixel rows per block (M tile)
    hm = hh * wp            # halo pixel rows

    def kernel(xm_ref, xh_ref, w_ref, b_ref, o_ref, slab_ref):
        # Stitch main + halo row blocks into one contiguous VMEM slab so every
        # tap below is a single 2-D slice (VMEM-only traffic).
        slab_ref[0:tm, :] = xm_ref[...]
        slab_ref[tm:tm + hm, :] = xh_ref[...]

        # 9 accumulating MXU dots, one per conv tap (dh, dw); operands bf16,
        # accumulation f32.  Tap (dh, dw) of output pixel-row m lives at slab
        # pixel-row m + dh*wp + dw.
        acc = None
        for dh in range(3):
            for dw in range(3):
                t = dh * 3 + dw
                tap = slab_ref[pl.ds(dh * wp + dw, tm), :]      # [tm, cin] bf16
                wt = w_ref[pl.ds(t * cin, cin), :]              # [cin, c4] bf16
                d = jnp.dot(tap, wt, preferred_element_type=jnp.float32)
                acc = d if acc is None else acc + d

        # bias + ReLU epilogue, f32 out (lane-dense: c4 % 128 == 0)
        o_ref[...] = jnp.maximum(acc + b_ref[...], 0.0)

    return kernel


# ------------------------- host-side weight packing ---------------------------

def _pack_weights(w_hwio, b, cin, cout):
    """Block-sparse weight [9*Cin, 4*Cp] (bf16) + bias [1, 4*Cp] (f32), built once."""
    cp = _round_up(cout, 32)            # 4*cp is a multiple of 128 -> lane-dense out
    c4 = 4 * cp
    w = np.asarray(w_hwio, np.float32)                  # [2, 2, Cin, Cout]
    w9 = np.zeros((9, cin, c4), np.float32)
    for pi in range(2):
        for pj in range(2):
            s = 2 * pi + pj
            for kh in range(2):
                for kw in range(2):
                    t = (pi + kh) * 3 + (pj + kw)       # tap (dh, dw) = (pi+kh, pj+kw)
                    w9[t, :, s * cp:s * cp + cout] = w[kh, kw]
    b4 = np.zeros((1, c4), np.float32)
    for s in range(4):
        b4[0, s * cp:s * cp + cout] = np.asarray(b, np.float32)
    return (jnp.asarray(w9.reshape(9 * cin, c4), jnp.bfloat16),
            jnp.asarray(b4, jnp.float32), cp, c4)


def _pick_tiles(h, wp, tile_rows):
    # th: output image rows per block, multiple of 8 with th*wp a multiple of 16
    # (safe bf16 sublane packing).  Prefer >= 2 row blocks so v7x megacore / the
    # software pipeline get more than one step per core.
    th = max(8, min(_round_up(tile_rows, 8), _round_up(h, 8)))
    if _round_up(h, th) == th and h > 8:
        th = max(8, _round_up(th // 2, 8))
    while (th * wp) % 16 != 0:
        th += 8
    # halo image rows: >= 3 rows are consumed by the tap reach; hh*wp a multiple
    # of 16 and hh | th so the halo BlockSpec index stays an exact block index.
    hh = None
    for cand in (4, 8, 16):
        if (cand * wp) % 16 == 0 and th % cand == 0:
            hh = cand
            break
    if hh is None:
        hh = th
    return th, hh


# --------------------------------- forward -----------------------------------

def build_up_sample(w_hwio, b, *, tile_rows=32, vmem_limit_bytes=32 * 1024 * 1024):
    """Returns a jitted forward(x_nchw) for Up_Sample(in=Cin, out=Cout)."""
    kh_, kw_, cin, cout = w_hwio.shape
    assert (kh_, kw_) == (2, 2)
    # Packed once on the host (outside the per-call hot path).
    w9, b4, cp, c4 = _pack_weights(w_hwio, b, cin, cout)

    def forward(x_nchw):
        n, cin_x, h, w = x_nchw.shape
        assert cin_x == cin
        wp = w + 2
        th, hh = _pick_tiles(h, wp, tile_rows)
        h_eff = _round_up(h, th)            # output rows computed (extras discarded)
        hp = h_eff + hh                     # padded rows incl. bottom slack for halo
        tm, hm = th * wp, hh * wp

        # Layout glue: NCHW -> NHWC (+ bf16 cast) and a single zero-pad pass.
        x_nhwc = jnp.transpose(x_nchw, (0, 2, 3, 1)).astype(jnp.bfloat16)
        x_pad = jnp.pad(x_nhwc, ((0, 0), (1, hp - 1 - h), (1, 1), (0, 0)))
        x3 = x_pad.reshape(n, hp * wp, cin)   # flattened pixel rows (free reshape)

        grid = (n, h_eff // th)
        kernel = _make_kernel(th, hh, wp, cin, c4)
        halo_step = th // hh

        out = pl.pallas_call(
            kernel,
            out_shape=jax.ShapeDtypeStruct((n, h_eff * wp, c4), jnp.float32),
            grid=grid,
            in_specs=[
                # main row block: padded image rows [i*th, i*th + th)
                pl.BlockSpec((None, tm, cin), lambda ni, i: (ni, i, 0)),
                # halo block: padded image rows [i*th + th, i*th + th + hh)
                pl.BlockSpec((None, hm, cin),
                             lambda ni, i: (ni, (i + 1) * halo_step, 0)),
                # weight + bias: tiny, VMEM-resident (constant index_map)
                pl.BlockSpec((9 * cin, c4), lambda ni, i: (0, 0)),
                pl.BlockSpec((1, c4), lambda ni, i: (0, 0)),
            ],
            out_specs=pl.BlockSpec((None, tm, c4), lambda ni, i: (ni, i, 0)),
            scratch_shapes=[pltpu.VMEM(((th + hh) * wp, cin), jnp.bfloat16)],
            compiler_params=pltpu.CompilerParams(
                dimension_semantics=("parallel", "parallel"),
                vmem_limit_bytes=vmem_limit_bytes),
        )(x3, x3, w9, b4)

        # depth-to-space: [(io, jo'), (pi, pj, co)] -> [N, 2H, 2W, Cout] -> NCHW
        y = out.reshape(n, h_eff, wp, 2, 2, cp)[:, :h, :w, :, :, :cout]
        y = jnp.transpose(y, (0, 1, 3, 2, 4, 5)).reshape(n, 2 * h, 2 * w, cout)
        return jnp.transpose(y, (0, 3, 1, 2))

    return jax.jit(forward)


# ------------------------- literal reference (checking) ----------------------

def up_sample_reference(x_nchw, w_hwio, b):
    """Literal nearest-x2 upsample -> dilated 2x2 conv -> ReLU (the nn.Module)."""
    x = jnp.transpose(x_nchw, (0, 2, 3, 1))
    xu = jnp.repeat(jnp.repeat(x, 2, axis=1), 2, axis=2)
    y = jax.lax.conv_general_dilated(
        xu, w_hwio, window_strides=(1, 1), padding=((1, 1), (1, 1)),
        rhs_dilation=(2, 2), dimension_numbers=("NHWC", "HWIO", "NHWC"),
        precision=jax.lax.Precision.HIGHEST)
    y = jnp.maximum(y + b, 0.0)
    return jnp.transpose(y, (0, 3, 1, 2))


# ------------------------------------ main -----------------------------------

if __name__ == "__main__":
    key = jax.random.PRNGKey(0)
    kx, kw, kb = jax.random.split(key, 3)

    # Up_Sample(in_layers=64, out_layers=32), PyTorch-convention NCHW input.
    N, Cin, H, W, Cout = 2, 64, 16, 16, 32
    x = jax.random.normal(kx, (N, Cin, H, W), jnp.float32)
    # HWIO weights: w[kh, kw, ci, co] corresponds to torch conv.weight[co, ci, kh, kw]
    w = jax.random.normal(kw, (2, 2, Cin, Cout), jnp.float32) / jnp.sqrt(2 * 2 * Cin)
    b = jax.random.normal(kb, (Cout,), jnp.float32) * 0.01

    fwd = build_up_sample(w, b)
    y = jax.block_until_ready(fwd(x))

    assert y.shape == (N, Cout, 2 * H, 2 * W), y.shape
    assert bool(jnp.all(jnp.isfinite(y)))
    assert bool(jnp.all(y >= 0.0))                      # ReLU output range

    # Tight check against the module semantics with the same bf16 input quantization
    # (the kernel deliberately runs the MXU in bf16 with f32 accumulation).
    xq = x.astype(jnp.bfloat16).astype(jnp.float32)
    wq = w.astype(jnp.bfloat16).astype(jnp.float32)
    y_ref = up_sample_reference(xq, wq, b)
    assert bool(jnp.allclose(y, y_ref, rtol=1e-3, atol=1e-3)), \
        float(jnp.max(jnp.abs(y - y_ref)))

    # Loose sanity check against the pure-f32 module.
    y_f32 = up_sample_reference(x, w, b)
    assert bool(jnp.allclose(y, y_f32, rtol=1e-1, atol=1e-1)), \
        float(jnp.max(jnp.abs(y - y_f32)))

    print("KERNEL_OK")
</pallas_src>

<mosaic_0001>
module attributes {stable_mosaic.version = 11 : i64} {
  func.func @kernel(%arg0: i32, %arg1: i32, %arg2: memref<1x144x64xbf16, #tpu.memory_space<vmem>>, %arg3: memref<1x144x64xbf16, #tpu.memory_space<vmem>>, %arg4: memref<576x128xbf16, #tpu.memory_space<vmem>>, %arg5: memref<1x128xf32, #tpu.memory_space<vmem>>, %arg6: memref<1x144x128xf32, #tpu.memory_space<vmem>>, %arg7: memref<288x64xbf16, #tpu.memory_space<vmem>>) attributes {dimension_semantics = [#tpu.dimension_semantics<parallel>, #tpu.dimension_semantics<parallel>], iteration_bounds = array<i64: 2, 2>, scalar_prefetch = 0 : i64, scratch_operands = 1 : i64, tpu.core_type = #tpu.core_type<tc>, window_params = [{transform_indices = @transform_0, window_bounds = array<i64: 1, 144, 64>}, {transform_indices = @transform_1, window_bounds = array<i64: 1, 144, 64>}, {pipeline_mode = #tpu.pipeline_mode<synchronous>, transform_indices = @transform_2, window_bounds = array<i64: 576, 128>}, {pipeline_mode = #tpu.pipeline_mode<synchronous>, transform_indices = @transform_3, window_bounds = array<i64: 1, 128>}, {transform_indices = @transform_4, window_bounds = array<i64: 1, 144, 128>}]} {
    %c0 = arith.constant 0 : index
    %c0_0 = arith.constant 0 : index
    %c0_1 = arith.constant 0 : index
    %0 = vector.load %arg2[%c0, %c0_0, %c0_1] : memref<1x144x64xbf16, #tpu.memory_space<vmem>>, vector<1x144x64xbf16>
    %1 = vector.shape_cast %0 : vector<1x144x64xbf16> to vector<144x64xbf16>
    %c0_2 = arith.constant 0 : index
    %c0_3 = arith.constant 0 : index
    %2 = vector.load %arg7[%c0_2, %c0_3] : memref<288x64xbf16, #tpu.memory_space<vmem>>, vector<144x64xbf16>
    tpu.vector_store %arg7[%c0_2, %c0_3], %1 {strides = array<i32>} : memref<288x64xbf16, #tpu.memory_space<vmem>>, vector<144x64xbf16>,
    %c0_4 = arith.constant 0 : index
    %c0_5 = arith.constant 0 : index
    %c0_6 = arith.constant 0 : index
    %3 = vector.load %arg3[%c0_4, %c0_5, %c0_6] : memref<1x144x64xbf16, #tpu.memory_space<vmem>>, vector<1x144x64xbf16>
    %4 = vector.shape_cast %3 : vector<1x144x64xbf16> to vector<144x64xbf16>
    %c144 = arith.constant 144 : index
    %c0_7 = arith.constant 0 : index
    %5 = vector.load %arg7[%c144, %c0_7] : memref<288x64xbf16, #tpu.memory_space<vmem>>, vector<144x64xbf16>
    tpu.vector_store %arg7[%c144, %c0_7], %4 {strides = array<i32>} : memref<288x64xbf16, #tpu.memory_space<vmem>>, vector<144x64xbf16>,
    %c0_8 = arith.constant 0 : index
    %c0_9 = arith.constant 0 : index
    %6 = vector.load %arg7[%c0_8, %c0_9] : memref<288x64xbf16, #tpu.memory_space<vmem>>, vector<144x64xbf16>
    %c0_10 = arith.constant 0 : index
    %c0_11 = arith.constant 0 : index
    %7 = vector.load %arg4[%c0_10, %c0_11] : memref<576x128xbf16, #tpu.memory_space<vmem>>, vector<64x128xbf16>
    %cst = arith.constant dense<0.000000e+00> : vector<144x128xf32>
    %8 = tpu.matmul %6, %7, %cst {dimension_numbers = #tpu.dot_dimension_numbers<[1], [0], [0], [1], [0, 0, 1, 1], [], []>} : vector<144x64xbf16>, vector<64x128xbf16>, vector<144x128xf32> -> vector<144x128xf32>
    %c1 = arith.constant 1 : index
    %c0_12 = arith.constant 0 : index
    %9 = vector.load %arg7[%c1, %c0_12] : memref<288x64xbf16, #tpu.memory_space<vmem>>, vector<144x64xbf16>
    %c64 = arith.constant 64 : index
    %c0_13 = arith.constant 0 : index
    %10 = vector.load %arg4[%c64, %c0_13] : memref<576x128xbf16, #tpu.memory_space<vmem>>, vector<64x128xbf16>
    %cst_14 = arith.constant dense<0.000000e+00> : vector<144x128xf32>
    %11 = tpu.matmul %9, %10, %cst_14 {dimension_numbers = #tpu.dot_dimension_numbers<[1], [0], [0], [1], [0, 0, 1, 1], [], []>} : vector<144x64xbf16>, vector<64x128xbf16>, vector<144x128xf32> -> vector<144x128xf32>
    %12 = arith.addf %8, %11 : vector<144x128xf32>
    %c2 = arith.constant 2 : index
    %c0_15 = arith.constant 0 : index
    %13 = vector.load %arg7[%c2, %c0_15] : memref<288x64xbf16, #tpu.memory_space<vmem>>, vector<144x64xbf16>
    %c128 = arith.constant 128 : index
    %c0_16 = arith.constant 0 : index
    %14 = vector.load %arg4[%c128, %c0_16] : memref<576x128xbf16, #tpu.memory_space<vmem>>, vector<64x128xbf16>
    %cst_17 = arith.constant dense<0.000000e+00> : vector<144x128xf32>
    %15 = tpu.matmul %13, %14, %cst_17 {dimension_numbers = #tpu.dot_dimension_numbers<[1], [0], [0], [1], [0, 0, 1, 1], [], []>} : vector<144x64xbf16>, vector<64x128xbf16>, vector<144x128xf32> -> vector<144x128xf32>
    %16 = arith.addf %12, %15 : vector<144x128xf32>
    %c18 = arith.constant 18 : index
    %c0_18 = arith.constant 0 : index
    %17 = vector.load %arg7[%c18, %c0_18] : memref<288x64xbf16, #tpu.memory_space<vmem>>, vector<144x64xbf16>
    %c192 = arith.constant 192 : index
    %c0_19 = arith.constant 0 : index
    %18 = vector.load %arg4[%c192, %c0_19] : memref<576x128xbf16, #tpu.memory_space<vmem>>, vector<64x128xbf16>
    %cst_20 = arith.constant dense<0.000000e+00> : vector<144x128xf32>
    %19 = tpu.matmul %17, %18, %cst_20 {dimension_numbers = #tpu.dot_dimension_numbers<[1], [0], [0], [1], [0, 0, 1, 1], [], []>} : vector<144x64xbf16>, vector<64x128xbf16>, vector<144x128xf32> -> vector<144x128xf32>
    %20 = arith.addf %16, %19 : vector<144x128xf32>
    %c19 = arith.constant 19 : index
    %c0_21 = arith.constant 0 : index
    %21 = vector.load %arg7[%c19, %c0_21] : memref<288x64xbf16, #tpu.memory_space<vmem>>, vector<144x64xbf16>
    %c256 = arith.constant 256 : index
    %c0_22 = arith.constant 0 : index
    %22 = vector.load %arg4[%c256, %c0_22] : memref<576x128xbf16, #tpu.memory_space<vmem>>, vector<64x128xbf16>
    %cst_23 = arith.constant dense<0.000000e+00> : vector<144x128xf32>
    %23 = tpu.matmul %21, %22, %cst_23 {dimension_numbers = #tpu.dot_dimension_numbers<[1], [0], [0], [1], [0, 0, 1, 1], [], []>} : vector<144x64xbf16>, vector<64x128xbf16>, vector<144x128xf32> -> vector<144x128xf32>
    %24 = arith.addf %20, %23 : vector<144x128xf32>
    %c20 = arith.constant 20 : index
    %c0_24 = arith.constant 0 : index
    %25 = vector.load %arg7[%c20, %c0_24] : memref<288x64xbf16, #tpu.memory_space<vmem>>, vector<144x64xbf16>
    %c320 = arith.constant 320 : index
    %c0_25 = arith.constant 0 : index
    %26 = vector.load %arg4[%c320, %c0_25] : memref<576x128xbf16, #tpu.memory_space<vmem>>, vector<64x128xbf16>
    %cst_26 = arith.constant dense<0.000000e+00> : vector<144x128xf32>
    %27 = tpu.matmul %25, %26, %cst_26 {dimension_numbers = #tpu.dot_dimension_numbers<[1], [0], [0], [1], [0, 0, 1, 1], [], []>} : vector<144x64xbf16>, vector<64x128xbf16>, vector<144x128xf32> -> vector<144x128xf32>
    %28 = arith.addf %24, %27 : vector<144x128xf32>
    %c36 = arith.constant 36 : index
    %c0_27 = arith.constant 0 : index
    %29 = vector.load %arg7[%c36, %c0_27] : memref<288x64xbf16, #tpu.memory_space<vmem>>, vector<144x64xbf16>
    %c384 = arith.constant 384 : index
    %c0_28 = arith.constant 0 : index
    %30 = vector.load %arg4[%c384, %c0_28] : memref<576x128xbf16, #tpu.memory_space<vmem>>, vector<64x128xbf16>
    %cst_29 = arith.constant dense<0.000000e+00> : vector<144x128xf32>
    %31 = tpu.matmul %29, %30, %cst_29 {dimension_numbers = #tpu.dot_dimension_numbers<[1], [0], [0], [1], [0, 0, 1, 1], [], []>} : vector<144x64xbf16>, vector<64x128xbf16>, vector<144x128xf32> -> vector<144x128xf32>
    %32 = arith.addf %28, %31 : vector<144x128xf32>
    %c37 = arith.constant 37 : index
    %c0_30 = arith.constant 0 : index
    %33 = vector.load %arg7[%c37, %c0_30] : memref<288x64xbf16, #tpu.memory_space<vmem>>, vector<144x64xbf16>
    %c448 = arith.constant 448 : index
    %c0_31 = arith.constant 0 : index
    %34 = vector.load %arg4[%c448, %c0_31] : memref<576x128xbf16, #tpu.memory_space<vmem>>, vector<64x128xbf16>
    %cst_32 = arith.constant dense<0.000000e+00> : vector<144x128xf32>
    %35 = tpu.matmul %33, %34, %cst_32 {dimension_numbers = #tpu.dot_dimension_numbers<[1], [0], [0], [1], [0, 0, 1, 1], [], []>} : vector<144x64xbf16>, vector<64x128xbf16>, vector<144x128xf32> -> vector<144x128xf32>
    %36 = arith.addf %32, %35 : vector<144x128xf32>
    %c38 = arith.constant 38 : index
    %c0_33 = arith.constant 0 : index
    %37 = vector.load %arg7[%c38, %c0_33] : memref<288x64xbf16, #tpu.memory_space<vmem>>, vector<144x64xbf16>
    %c512 = arith.constant 512 : index
    %c0_34 = arith.constant 0 : index
    %38 = vector.load %arg4[%c512, %c0_34] : memref<576x128xbf16, #tpu.memory_space<vmem>>, vector<64x128xbf16>
    %cst_35 = arith.constant dense<0.000000e+00> : vector<144x128xf32>
    %39 = tpu.matmul %37, %38, %cst_35 {dimension_numbers = #tpu.dot_dimension_numbers<[1], [0], [0], [1], [0, 0, 1, 1], [], []>} : vector<144x64xbf16>, vector<64x128xbf16>, vector<144x128xf32> -> vector<144x128xf32>
    %40 = arith.addf %36, %39 : vector<144x128xf32>
    %c0_36 = arith.constant 0 : index
    %c0_37 = arith.constant 0 : index
    %41 = vector.load %arg5[%c0_36, %c0_37] : memref<1x128xf32, #tpu.memory_space<vmem>>, vector<1x128xf32>
    %42 = vector.broadcast %41 : vector<1x128xf32> to vector<144x128xf32>
    %43 = arith.addf %40, %42 : vector<144x128xf32>
    %cst_38 = arith.constant 0.000000e+00 : f32
    %44 = vector.broadcast %cst_38 : f32 to vector<144x128xf32>
    %45 = arith.maximumf %43, %44 : vector<144x128xf32>
    %c0_39 = arith.constant 0 : index
    %c0_40 = arith.constant 0 : index
    %c0_41 = arith.constant 0 : index
    %46 = vector.load %arg6[%c0_39, %c0_40, %c0_41] : memref<1x144x128xf32, #tpu.memory_space<vmem>>, vector<1x144x128xf32>
    %47 = vector.shape_cast %46 : vector<1x144x128xf32> to vector<144x128xf32>
    %48 = vector.shape_cast %45 : vector<144x128xf32> to vector<1x144x128xf32>
    tpu.vector_store %arg6[%c0_39, %c0_40, %c0_41], %48 {strides = array<i32>} : memref<1x144x128xf32, #tpu.memory_space<vmem>>, vector<1x144x128xf32>,
    return
  }
  func.func @transform_0(%arg0: i32, %arg1: i32) -> (i32, i32, i32) {
    %c0_i32 = arith.constant 0 : i32
    %c0_i32_0 = arith.constant 0 : i32
    return %arg0, %arg1, %c0_i32 : i32, i32, i32
  }
  func.func @transform_1(%arg0: i32, %arg1: i32) -> (i32, i32, i32) {
    %c1_i32 = arith.constant 1 : i32
    %0 = arith.addi %arg1, %c1_i32 : i32
    %c1_i32_0 = arith.constant 1 : i32
    %1 = arith.muli %0, %c1_i32_0 : i32
    %c0_i32 = arith.constant 0 : i32
    %c0_i32_1 = arith.constant 0 : i32
    return %arg0, %1, %c0_i32 : i32, i32, i32
  }
  func.func @transform_2(%arg0: i32, %arg1: i32) -> (i32, i32) {
    %c0_i32 = arith.constant 0 : i32
    %c0_i32_0 = arith.constant 0 : i32
    %c0_i32_1 = arith.constant 0 : i32
    return %c0_i32, %c0_i32_0 : i32, i32
  }
  func.func @transform_3(%arg0: i32, %arg1: i32) -> (i32, i32) {
    %c0_i32 = arith.constant 0 : i32
    %c0_i32_0 = arith.constant 0 : i32
    %c0_i32_1 = arith.constant 0 : i32
    return %c0_i32, %c0_i32_0 : i32, i32
  }
  func.func @transform_4(%arg0: i32, %arg1: i32) -> (i32, i32, i32) {
    %c0_i32 = arith.constant 0 : i32
    %c0_i32_0 = arith.constant 0 : i32
    return %arg0, %arg1, %c0_i32 : i32, i32, i32
  }
}

</mosaic_0001>

<bundles_post_ra>
// kernel: forward.1
= control target key start
LH: loop header
LB: loop body
LE: loop exit
PB: predicated region body
PF: predicated region fallthrough
CT: control target
= control target key end

     0   :  { %s3466_s15 = smov 0   ;;  %s3468_s16 = smov 0   ;;  %s4504_s0 = inlined_call_operand.vmem [shape: bf16[2,432,64], index: 0, kind: input, shape index: {}, may-alias: {0,1}]   ;;  %s4505_s1 = inlined_call_operand.vmem [shape: bf16[2,432,64], index: 1, kind: input, shape index: {}, may-alias: {0,1}]   ;;  %s4506_s2 = inlined_call_operand.vmem [shape: bf16[576,128], index: 2, kind: input, shape index: {}]   ;;  %s4507_s3 = inlined_call_operand.vmem [shape: f32[1,128], index: 3, kind: input, shape index: {}]   ;;  %s4508_s4 = inlined_call_operand.vmem [shape: f32[2,288,128], index: 4, kind: output, shape index: {}]  }
   0x1   :  { %s3470_s17 = smov 0   ;;  %s3472_s18 = smov 0  }
   0x2   :  { %s3474_s19 = smov 0  }
   0x3 LB: > { %s23_s20 = sadd.s32 1, %s3429_s17  ;;  %s26_s21 = sadd.s32 1, %s3433_s18  ;;  %s3437_s19 = sphi %s3474_s19, %s14_s19   ;;  %s3433_s18 = sphi %s3472_s18, %s4512_s18   ;;  %s3429_s17 = sphi %s3470_s17, %s4511_s17   ;;  %s3425_s16 = sphi %s3468_s16, %s4510_s16   ;;  %s3421_s15 = sphi %s3466_s15, %s4509_s15  }
   0x4   : > { %p24_p0 = scmp.ge.s32.totalorder %s23_s20, 2  ;;  %p2634_p1 = scmp.ge.s32.totalorder %s3437_s19, 1 }
   0x5   : > { %p204_p2 = scmp.lt.s32.totalorder %s3437_s19, 5 }
   0x6   : > { %s4514_s20 = smov (%p24_p0, %s23_s20), 0  ;;  %s4516_s21 = smov (!%p24_p0, %s26_s21), %s3433_s18 }
   0x7   : > { %p205_p3 = pnand %p2634_p1, %p204_p2  ;;  %p28_p4 = scmp.ge.s32.totalorder %s4516_s21, 2 }
   0x8   : > { %v3341_v0 = vld [vmem:[%s4506_s2 + $0x20] sm:$0xff] (!%p205_p3)   ;;  %v3439_v1 = vmov (!%p205_p3), 0.0   ;;  %v3342_v2 = vld [vmem:[%s4506_s2 + $0x28] sm:$0xff] (!%p205_p3)   ;;  %s3509_s26 = smul.u32 (!%p205_p3), 18, %s3421_s15  ;;  %p249_p5 = scmp.lt.s32.totalorder (!%p205_p3), %s3425_s16, 1  ;;  %vm3440_vm0 = vmmov (!%p205_p3), 0  }
   0x9   : > { %s4518_s21 = smov (%p28_p4, %s4516_s21), 0  ;;  %208 = sbr.rel (%p205_p3) target bundleno = 580 (0x244), region = 36 }
   0xa   : > { %2893 = vmatprep.subr.bf16.mxu0 (!%p205_p3), %v3439_v1  ;;  %3289 = vmatprep.subr.bf16.mxu1 (!%p205_p3), %v3439_v1  ;;  %p251_p6 = scmp.lt.s32.totalorder (!%p205_p3), %s3509_s26, 53  ;;  %v3343_v3 = vld [vmem:[%s4506_s2 + $0x30] sm:$0xff] (!%p205_p3)   ;;  %s258_s5 = sadd.s32 (!%p205_p3), 1, %s3421_s15  ;;  %v3344_v4 = vld [vmem:[%s4506_s2 + $0x38] sm:$0xff] (!%p205_p3)   ;;  %vm353_vm1 = vcmask (!%p205_p3), 523264   ;;  %v3349_v28 = vld [vmem:[%s4506_s2 + $0x40] sm:$0xff] (!%p205_p3)  }
   0xb   : > { %2894 = vmatpush3.bf16.msra.mxu0 (!%p205_p3), %v3341_v0  ;;  %3293 = vmatpush3.bf16.msra.mxu1 (!%p205_p3), %v3341_v0  ;;  %s259_s7 = smul.u32 (!%p205_p3), 18, %s258_s5  ;;  %vm470_vm2 = vsmask.f32 (!%p205_p3), 7424  ;;  %v3350_v35 = vld [vmem:[%s4506_s2] sm:$0xff] (!%p205_p3)   ;;  %v3353_v40 = vld [vmem:[%s4506_s2 + $0x48] sm:$0xff] (!%p205_p3)   ;;  %v3357_v52 = vld [vmem:[%s4506_s2 + $0x50] sm:$0xff] (!%p205_p3)  }
   0xc   : > { %2895 = vmatprep.subr.bf16.mxu0 (!%p205_p3), %v3439_v1  ;;  %3290 = vmatprep.subr.bf16.mxu1 (!%p205_p3), %v3439_v1  ;;  %v3354_v47 = vld [vmem:[%s4506_s2 + $0x8] sm:$0xff] (!%p205_p3)   ;;  %v3358_v54 = vld [vmem:[%s4506_s2 + $0x10] sm:$0xff] (!%p205_p3)   ;;  %v3368_v59 = vld [vmem:[%s4506_s2 + $0x58] sm:$0xff] (!%p205_p3)   ;;  %vm869_vm3 = vcmask (!%p205_p3), 1046528   ;;  %vm1293_vm4 = vsmask.f32 (!%p205_p3), 6400 }
   0xd   : > { %2901 = vmatprep.mubr.msk.bf16.mxu0 (!%p205_p3), %vm3440_vm0, %v3439_v1  ;;  %2921 = vmatprep.mubr.msk.bf16.mxu1 (!%p205_p3), %vm3440_vm0, %v3439_v1  ;;  %p262_p7 = scmp.lt.s32.totalorder (!%p205_p3), %s259_s7, 53  ;;  %v3367_v62 = vld [vmem:[%s4506_s2 + $0x18] sm:$0xff] (!%p205_p3)   ;;  %vm1568_vm5 = vcmask (!%p205_p3), 1045504   ;;  %vm1992_vm6 = vsmask.f32 (!%p205_p3), 5376  ;;  %vm2267_vm7 = vcmask (!%p205_p3), 1044480  }
   0xe   : > { %p273_p8 = scmp.lt.s32.totalorder (!%p205_p3), %s3509_s26, 35 }
   0xf   : > { %2896 = vmatpush3.bf16.msra.mxu0 (!%p205_p3), %v3342_v2  ;;  %3294 = vmatpush3.bf16.msra.mxu1 (!%p205_p3), %v3342_v2 }
  0x10   : > { %s4520_s16 = smov (!%p249_p5, %s3425_s16), 1  ;;  %2897 = vmatprep.subr.bf16.mxu0 %v3439_v1  ;;  %3291 = vmatprep.subr.bf16.mxu1 %v3439_v1  ;;  %s4522_s7 = smov (!%p262_p7, %s259_s7), 53 }
  0x11   : > { %s252_s29 = scalar_select %p251_p6, %s3509_s26, 53 }
  0x12   : > { %s3297_s30 = smul.u32 54, %s4520_s16  ;;  %s4524_s26 = smov (!%p273_p8, %s3509_s26), 35 }
  0x13   : > { %2898 = vmatpush3.bf16.msra.mxu0 %v3343_v3  ;;  %3295 = vmatpush3.bf16.msra.mxu1 %v3343_v3  ;;  %s3298_s8 = smul.u32 36, %s4520_s16 }
  0x14   : > { %s254_s6 = sadd.s32 %s3297_s30, %s252_s29  ;;  %2899 = vmatprep.subr.bf16.mxu0 %v3439_v1  ;;  %3292 = vmatprep.subr.bf16.mxu1 %v3439_v1  ;;  %s265_s14 = sadd.s32 %s3297_s30, %s4522_s7 }
  0x15   : > { %s2635_s10 = sshll.u32 %s254_s6, 2  ;;  %s2636_s15 = sshll.u32 %s265_s14, 2 }
  0x16   : > { %s256_s13 = scalar_lea.vmem %s4504_s0, %s2635_s10  ;;  %s3550_s24 = scalar_lea.vmem %s4505_s1, %s2636_s15 }
  0x17   : > { %v3345_v5 = vld [vmem:[%s256_s13] sm:$0xff]   ;;  %v3346_v6 = vld [vmem:[%s256_s13 + $0x8] sm:$0xff]   ;;  %2900 = vmatpush3.bf16.msra.mxu0 %v3344_v4  ;;  %3296 = vmatpush3.bf16.msra.mxu1 %v3344_v4  ;;  %v3348_v8 = vld [vmem:[%s256_s13 + $0x30] sm:$0xff]   ;;  %s276_s9 = sadd.s32 %s3298_s8, %s4524_s26 }
  0x18   : > { %2981 = vmatprep.subr.bf16.mxu0 %v3439_v1  ;;  %354 = vst.msk [vmem:[#allocation2] sm:$0xff] %vm353_vm1, %v3345_v5  ;;  %355 = vst.msk [vmem:[#allocation2 + $0x8] sm:$0xff] %vm353_vm1, %v3346_v6  ;;  %v3347_v7 = vld [vmem:[%s256_s13 + $0x28] sm:$0xff]   ;;  %2937 = vmatprep.subr.bf16.mxu1 %v3439_v1  ;;  %v3351_v9 = vld [vmem:[%s256_s13 + $0x10] sm:$0xff]   ;;  %s2637_s16 = sshll.u32 %s276_s9, 3 }
  0x19   : > { %359 = vst.msk [vmem:[#allocation2 + $0x28] sm:$0xff] %vm353_vm1, %v3347_v7  ;;  %360 = vst.msk [vmem:[#allocation2 + $0x30] sm:$0xff] %vm353_vm1, %v3348_v8  ;;  %v3352_v10 = vld [vmem:[%s256_s13 + $0x38] sm:$0xff]   ;;  %v3356_v12 = vld [vmem:[%s256_s13 + $0x40] sm:$0xff]  }
  0x1a   : > { %356 = vst.msk [vmem:[#allocation2 + $0x10] sm:$0xff] %vm353_vm1, %v3351_v9  ;;  %v3355_v11 = vld [vmem:[%s256_s13 + $0x18] sm:$0xff]   ;;  %361 = vst.msk [vmem:[#allocation2 + $0x38] sm:$0xff] %vm353_vm1, %v3352_v10  ;;  %v3359_v13 = vld [vmem:[%s256_s13 + $0x20] sm:$0xff]   ;;  %s4437_s13 = scalar_lea.vmem %s4508_s4, %s2637_s16 }
  0x1b   : > { %357 = vst.msk [vmem:[#allocation2 + $0x18] sm:$0xff] %vm353_vm1, %v3355_v11  ;;  %362 = vst.msk [vmem:[#allocation2 + $0x40] sm:$0xff] %vm353_vm1, %v3356_v12  ;;  %v3360_v26 = vld [vmem:[%s3550_s24] sm:$0xff]  }
  0x1c   : > { %358 = vst.msk [vmem:[#allocation2 + $0x20] sm:$0xff] %vm353_vm1, %v3359_v13  ;;  %435 = vst.msk [vmem:[#allocation2 + $0x48] sm:$0xff] %vm353_vm1, %v3360_v26 }
  0x1f   : > { %v3553_v14 = vld [vmem:[#allocation2] sm:$0xff]  ;;  %v3555_v15 = vld [vmem:[#allocation2 + $0x8] sm:$0xff] }
  0x20   : > { %v472_v16 = vshrl.u32 %v3553_v14, 16  ;;  %v474_v17 = vshll.u32 %v3553_v14, 16  ;;  %v479_v18 = vshll.u32 %v3555_v15, 16  ;;  %v3561_v19 = vld [vmem:[#allocation2 + $0x28] sm:$0xff]  ;;  %v3563_v20 = vld [vmem:[#allocation2 + $0x30] sm:$0xff]  ;;  %v483_v32 = vshrl.u32 %v3555_v15, 16 }
  0x21   : > { %v511_v23 = vshll.u32 %v3561_v19, 16  ;;  %v515_v24 = vshrl.u32 %v3561_v19, 16  ;;  %v3567_v25 = vld [vmem:[#allocation2 + $0x10] sm:$0xff]  ;;  %v519_v27 = vshll.u32 %v3563_v20, 16  ;;  %v3574_v29 = vld [vmem:[#allocation2 + $0x38] sm:$0xff]  ;;  %v523_v38 = vshrl.u32 %v3563_v20, 16 }
  0x22   : > { %v476_v21 = vrot.slane %v474_v17, 1  ;;  %v481_v22 = vrot.slane %v479_v18, 1  ;;  %v487_v33 = vshll.u32 %v3567_v25, 16  ;;  %v527_v39 = vshll.u32 %v3574_v29, 16  ;;  %v3603_v44 = vld [vmem:[#allocation2 + $0x18] sm:$0xff]  ;;  %v3620_v49 = vld [vmem:[#allocation2 + $0x40] sm:$0xff] }
  0x23   : > { %v3578_v31 = vrot.slane %v511_v23, 1  ;;  %v521_v34 = vrot.slane %v519_v27, 1  ;;  %v3618_v48 = vshll.u32 %v3603_v44, 16  ;;  %v491_v51 = vshrl.u32 %v3567_v25, 16  ;;  %v3634_v57 = vld [vmem:[#allocation2 + $0x20] sm:$0xff] }
  0x24   : > { %v477_v30 = vor.u32 %v476_v21, %v472_v16  ;;  %v485_v42 = vor.u32 %v483_v32, %v481_v22  ;;  %v489_v43 = vrot.slane %v487_v33, 1  ;;  %v529_v46 = vrot.slane %v527_v39, 1  ;;  %v461_v61 = vld [vmem:[#allocation2 + $0x48] sm:$0x1] }
  0x25   : > { %v517_v37 = vor.u32 %v515_v24, %v3578_v31  ;;  %v525_v45 = vor.u32 %v523_v38, %v521_v34  ;;  %v531_v53 = vshrl.u32 %v3574_v29, 16  ;;  %v535_v56 = vshll.u32 %v3620_v49, 16 }
  0x26   : > { %v482_v36 = vsel %vm470_vm2, %v477_v30, %v481_v22  ;;  %v490_v50 = vsel %vm470_vm2, %v485_v42, %v489_v43  ;;  %v497_v58 = vrot.slane %v3618_v48, 1  ;;  %v493_v60 = vor.u32 %v491_v51, %v489_v43 }
  0x27   : > { %2902 = vmatmul.mubr.msk.bf16.vlgmr.msra.gmra.mrb[0].mxu0 %vm353_vm1, %v482_v36  ;;  %v522_v41 = vsel %vm470_vm2, %v517_v37, %v521_v34  ;;  %v530_v55 = vsel %vm470_vm2, %v525_v45, %v529_v46  ;;  %v533_v63 = vor.u32 %v531_v53, %v529_v46  ;;  %v537_v0 = vrot.slane %v535_v56, 1 }
  0x28   : > { %2982 = vmatpush3.bf16.msra.mxu0 %v3349_v28  ;;  %2905 = vmatprep.mubr.msk.bf16.mxu0 %vm3440_vm0, %v3439_v1  ;;  %v3656_v2 = vshrl.u32 %v3603_v44, 16  ;;  %v3659_v3 = vshll.u32 %v3634_v57, 16  ;;  %v543_v4 = vshll.u32 %v461_v61, 16  ;;  %v498_v5 = vsel %vm470_vm2, %v493_v60, %v497_v58  ;;  %v3385_v60 = vld [vmem:[%s3550_s24 + $0x8] sm:$0xff]  }
  0x29   : > { %2922 = vmatmul.mubr.msk.bf16.vlgmr.msra.gmra.mrb[0].mxu1 %vm353_vm1, %v522_v41  ;;  %2983 = vmatprep.subr.bf16.mxu0 %v3439_v1  ;;  %v3664_v6 = vrot.slane %v3620_v49, 1  ;;  %v887_v7 = vrot.slane %v461_v61, 1  ;;  %v539_v8 = vshrl.u32 %v3620_v49, 16  ;;  %v3668_v9 = vshrl.u32 %v3634_v57, 16  ;;  %436 = vst.msk [vmem:[#allocation2 + $0x50] sm:$0xff] %vm353_vm1, %v3385_v60  ;;  %v3384_v60 = vld [vmem:[%s4506_s2 + $0xd8] sm:$0xff]  }
  0x2a   : > { %2938 = vmatpush3.bf16.msra.mxu1 %v3350_v35  ;;  %2925 = vmatprep.mubr.msk.bf16.mxu1 %vm3440_vm0, %v3439_v1  ;;  %v538_v10 = vsel %vm470_vm2, %v533_v63, %v537_v0  ;;  %v1305_v12 = vrot.slane %v491_v51, 1  ;;  %v1308_v13 = vrot.slane %v487_v33, 2  ;;  %v501_v16 = vor.u32 %v3656_v2, %v497_v58 }
  0x2b   : > { %2939 = vmatprep.subr.bf16.mxu1 %v3439_v1  ;;  %v3674_v11 = vsel %vm869_vm3, %v3664_v6, %v887_v7  ;;  %v505_v17 = vrot.slane %v3659_v3, 1  ;;  %v545_v18 = vrot.slane %v543_v4, 1  ;;  %v1314_v21 = vrot.slane %v3656_v2, 1  ;;  %v3371_v4 = vld [vmem:[%s4506_s2 + $0x68] sm:$0xff]   ;;  %v3370_v7 = vld [vmem:[%s4506_s2 + $0x80] sm:$0xff]  }
  0x2c   : > { %2984 = vmatpush3.bf16.msra.mxu0 %v3353_v40  ;;  %v3685_v22 = vor.u32 %v1308_v13, %v1305_v12  ;;  %v1317_v26 = vrot.slane %v3618_v48, 2  ;;  %v1323_v28 = vrot.slane %v3668_v9, 1  ;;  %v1326_v30 = vrot.slane %v3659_v3, 2  ;;  %v3375_v12 = vld [vmem:[%s4506_s2 + $0x78] sm:$0xff]  }
  0x2d   : > { %2985 = vmatprep.subr.bf16.mxu0 %v3439_v1  ;;  %v541_v32 = vor.u32 %v539_v8, %v537_v0  ;;  %v1332_v33 = vrot.slane %v515_v24, 1  ;;  %v1335_v34 = vrot.slane %v511_v23, 2  ;;  %v1341_v37 = vrot.slane %v523_v38, 1 }
  0x2e   : > { %2940 = vmatpush3.bf16.msra.mxu1 %v3354_v47  ;;  %v1318_v35 = vor.u32 %v1317_v26, %v1314_v21  ;;  %v1327_v36 = vor.u32 %v1326_v30, %v1323_v28  ;;  %v1344_v40 = vrot.slane %v519_v27, 2  ;;  %v506_v41 = vsel %vm470_vm2, %v501_v16, %v505_v17 }
  0x2f   : > { %2906 = vmatmul.mubr.msk.bf16.gmra.mrb[4].mxu0 %vm353_vm1, %v490_v50  ;;  %2941 = vmatprep.subr.bf16.mxu1 %v3439_v1  ;;  %v1336_v42 = vor.u32 %v1335_v34, %v1332_v33  ;;  %v1350_v45 = vrot.slane %v531_v53, 1  ;;  %v1353_v27 = vrot.slane %v527_v39, 2  ;;  %v546_v46 = vsel %vm470_vm2, %v541_v32, %v545_v18  ;;  %v3730_v39 = vld [vmem:[#allocation2 + $0x48] sm:$0xff]  ;;  %v850_v53 = vld [vmem:[#allocation2] sm:$0xfe] }
  0x30   : > { %2909 = vmatprep.mubr.msk.bf16.mxu0 %vm3440_vm0, %v3439_v1  ;;  %2986 = vmatpush3.bf16.msra.mxu0 %v3357_v52  ;;  %v3704_v24 = vsel %vm1293_vm4, %v3685_v22, %v1318_v35  ;;  %v3707_v23 = vsel %vm1293_vm4, %v1318_v35, %v1327_v36  ;;  %v1345_v43 = vor.u32 %v1344_v40, %v1341_v37  ;;  %v1359_v58 = vrot.slane %v539_v8, 1  ;;  %v1063_v37 = vld [vmem:[#allocation2 + $0x8] sm:$0xfe] }
  0x31   : > { %2926 = vmatmul.mubr.msk.bf16.gmra.mrb[4].mxu1 %vm353_vm1, %v530_v55  ;;  %2987 = vmatprep.subr.bf16.mxu0 %v3439_v1  ;;  %v3712_v38 = vsel %vm1293_vm4, %v1327_v36, %v1336_v42  ;;  %v1354_v50 = vor.u32 %v1353_v27, %v1350_v45  ;;  %v509_v51 = vor.u32 %v3668_v9, %v505_v17  ;;  %v3778_v8 = vrot.slane %v3567_v25, 1  ;;  %v3376_v17 = vld [vmem:[%s4506_s2 + $0x98] sm:$0xff]   ;;  %v3377_v27 = vld [vmem:[%s4506_s2 + $0xa0] sm:$0xff]  }
  0x32   : > { %2929 = vmatprep.mubr.msk.bf16.mxu1 %vm3440_vm0, %v3439_v1  ;;  %2942 = vmatpush3.bf16.msra.mxu1 %v3358_v54  ;;  %v3718_v47 = vsel %vm1293_vm4, %v1336_v42, %v1345_v43  ;;  %v1106_v54 = vrot.slane %v3730_v39, 1  ;;  %v875_v16 = vrot.slane %v3603_v44, 1  ;;  %v877_v21 = vrot.slane %v3634_v57, 1 }
  0x33   : > { %2943 = vmatprep.subr.bf16.mxu1 %v3439_v1  ;;  %v3726_v52 = vsel %vm1293_vm4, %v1345_v43, %v1354_v50  ;;  %v514_v55 = vsel %vm470_vm2, %v509_v51, %v3578_v31  ;;  %v870_v31 = vrot.slane %v850_v53, 1  ;;  %v879_v28 = vrot.slane %v3561_v19, 1  ;;  %v3394_v53 = vld [vmem:[%s3550_s24 + $0x10] sm:$0xff]  }
  0x34   : > { %2988 = vmatpush3.bf16.msra.mxu0 %v3368_v59  ;;  %v1362_v59 = vrot.slane %v535_v56, 2  ;;  %v3742_v61 = vsel %vm869_vm3, %v3664_v6, %v1106_v54  ;;  %v871_v56 = vrot.slane %v3555_v15, 1  ;;  %v3813_v18 = vsel %vm869_vm3, %v3778_v8, %v875_v16  ;;  %437 = vst.msk [vmem:[#allocation2 + $0x58] sm:$0xff] %vm353_vm1, %v3394_v53 }
  0x35   : > { %3069 = vmatprep.subr.bf16.mxu0 %v3439_v1  ;;  %v3826_v26 = vsel %vm869_vm3, %v875_v16, %v877_v21  ;;  %v3838_v30 = vsel %vm869_vm3, %v877_v21, %v879_v28  ;;  %v881_v32 = vrot.slane %v3563_v20, 1  ;;  %v883_v34 = vrot.slane %v3574_v29, 1  ;;  %v3386_v16 = vld [vmem:[%s4506_s2 + $0xe0] sm:$0xff]  }
  0x36   : > { %2944 = vmatpush3.bf16.msra.mxu1 %v3367_v62  ;;  %v3369_v62 = vld [vmem:[%s4506_s2 + $0x60] sm:$0xff]   ;;  %v3747_v63 = vor.u32 %v1362_v59, %v1359_v58  ;;  %v874_v13 = vsel %vm869_vm3, %v871_v56, %v3778_v8  ;;  %v1295_v40 = vshrl.u32 %v1063_v37, 16  ;;  %v1091_v42 = vrot.slane %v1063_v37, 1  ;;  %v3383_v58 = vld [vmem:[%s4506_s2 + $0xb8] sm:$0xff]   ;;  %v3382_v59 = vld [vmem:[%s4506_s2 + $0xd0] sm:$0xff]  }
  0x37   : > { %2910 = vmatmul.mubr.msk.bf16.gmra.mrb[8].mxu0 %vm353_vm1, %v498_v5  ;;  %3025 = vmatprep.subr.bf16.mxu1 %v3439_v1  ;;  %v872_v5 = vsel %vm869_vm3, %v870_v31, %v871_v56  ;;  %v3850_v33 = vsel %vm869_vm3, %v879_v28, %v881_v32  ;;  %v3862_v35 = vsel %vm869_vm3, %v881_v32, %v883_v34  ;;  %v1574_v32 = vrot.slane %v3634_v57, 2 }
  0x38   : > { %2913 = vmatprep.mubr.msk.bf16.mxu0 %vm3440_vm0, %v3439_v1  ;;  %v3756_v0 = vsel %vm1293_vm4, %v1354_v50, %v3747_v63  ;;  %v3874_v36 = vsel %vm869_vm3, %v883_v34, %v3664_v6  ;;  %v1297_v43 = vrot.slane %v1295_v40, 1  ;;  %v1093_v45 = vsel %vm869_vm3, %v1091_v42, %v3778_v8  ;;  %v3379_v50 = vld [vmem:[%s4506_s2 + $0xa8] sm:$0xff]   ;;  %v3392_v34 = vld [vmem:[%s4506_s2 + $0xf8] sm:$0xff]  }
  0x39   : > { %2930 = vmatmul.mubr.msk.bf16.gmra.mrb[8].mxu1 %vm353_vm1, %v538_v10  ;;  %v3372_v10 = vld [vmem:[%s4506_s2 + $0x88] sm:$0xff]   ;;  %v3393_v40 = vld [vmem:[%s4506_s2 + $0x118] sm:$0xff]   ;;  %v1582_v53 = vrot.slane %v3620_v49, 2 }
  0x3a   : > { %2933 = vmatprep.mubr.msk.bf16.mxu1 %vm3440_vm0, %v3439_v1 }
  0x3f   : > { %2914 = vmatmul.mubr.msk.bf16.gmra.mrb[12].mxu0 %vm353_vm1, %v506_v41  ;;  %v1298_v41 = vshll.u32 %v1063_v37, 16  ;;  %v1576_v37 = vrot.slane %v3561_v19, 2 }
  0x40   : > { %2917 = vmatprep.mubr.msk.bf16.mxu0 %vm3440_vm0, %v3439_v1 }
  0x41   : > { %2934 = vmatmul.mubr.msk.bf16.gmra.mrb[12].mxu1 %vm353_vm1, %v546_v46  ;;  %v1300_v6 = vrot.slane %v1298_v41, 2  ;;  %v1577_v41 = vsel %vm1568_vm5, %v1574_v32, %v1576_v37 }
  0x42   : > { %2945 = vmatprep.mubr.msk.bf16.mxu1 %vm3440_vm0, %v3439_v1 }
  0x43   : > { %v1301_v46 = vor.u32 %v1300_v6, %v1297_v43  ;;  %v1580_v43 = vrot.slane %v3574_v29, 2 }
  0x45   : > { %v1310_v51 = vsel %vm1293_vm4, %v1301_v46, %v3685_v22  ;;  %v3380_v22 = vld [vmem:[%s4506_s2 + $0xc8] sm:$0xff]  }
  0x47   : > { %2918 = vmatmul.mubr.msk.bf16.gmra.mrb[16].mxu0 %vm353_vm1, %v514_v55  ;;  %v3381_v55 = vld [vmem:[%s4506_s2 + $0xb0] sm:$0xff]  }
  0x48   : > { %2989 = vmatprep.mubr.msk.bf16.mxu0 %vm3440_vm0, %v3439_v1 }
  0x49   : > { %2946 = vmatmul.mubr.msk.bf16.vlgmr.msra.gmra.mrb[16].mxu1 %vm353_vm1, %v3553_v14  ;;  %v3373_v14 = vld [vmem:[%s4506_s2 + $0x70] sm:$0xff]  }
  0x4a   : > { %3026 = vmatpush3.bf16.msra.mxu1 %v3369_v62  ;;  %2949 = vmatprep.mubr.msk.bf16.mxu1 %vm3440_vm0, %v3439_v1  ;;  %v1072_v62 = vld [vmem:[#allocation2 + $0x50] sm:$0x1] }
  0x4b   : > { %3027 = vmatprep.subr.bf16.mxu1 %v3439_v1 }
  0x4e   : > { %3028 = vmatpush3.bf16.msra.mxu1 %v3371_v4 }
  0x4f   : > { %2990 = vmatmul.mubr.msk.bf16.vlgmr.msra.gmra.mrb[20].mxu0 %vm353_vm1, %v872_v5  ;;  %3029 = vmatprep.subr.bf16.mxu1 %v3439_v1  ;;  %v1108_v5 = vrot.slane %v1072_v62, 1 }
  0x50   : > { %3070 = vmatpush3.bf16.msra.mxu0 %v3370_v7  ;;  %2993 = vmatprep.mubr.msk.bf16.mxu0 %vm3440_vm0, %v3439_v1 }
  0x51   : > { %2950 = vmatmul.mubr.msk.bf16.gmra.mrb[20].mxu1 %vm353_vm1, %v3555_v15  ;;  %3071 = vmatprep.subr.bf16.mxu0 %v3439_v1  ;;  %v3374_v15 = vld [vmem:[%s4506_s2 + $0x90] sm:$0xff]   ;;  %v1109_v8 = vsel %vm869_vm3, %v1106_v54, %v1108_v5 }
  0x52   : > { %2953 = vmatprep.mubr.msk.bf16.mxu1 %vm3440_vm0, %v3439_v1  ;;  %3030 = vmatpush3.bf16.msra.mxu1 %v3373_v14 }
  0x53   : > { %3031 = vmatprep.subr.bf16.mxu1 %v3439_v1 }
  0x54   : > { %3072 = vmatpush3.bf16.msra.mxu0 %v3372_v10  ;;  %v1557_v10 = vld [vmem:[#allocation2 + $0x8] sm:$0xfc] }
  0x55   : > { %3073 = vmatprep.subr.bf16.mxu0 %v3439_v1 }
  0x56   : > { %3032 = vmatpush3.bf16.msra.mxu1 %v3375_v12  ;;  %v1569_v12 = vrot.slane %v1557_v10, 2  ;;  %v4120_v10 = vld [vmem:[#allocation2 + $0x50] sm:$0xff] }
  0x57   : > { %2994 = vmatmul.mubr.msk.bf16.gmra.mrb[24].mxu0 %vm353_vm1, %v874_v13  ;;  %3113 = vmatprep.subr.bf16.mxu1 %v3439_v1 }
  0x58   : > { %2997 = vmatprep.mubr.msk.bf16.mxu0 %vm3440_vm0, %v3439_v1  ;;  %3074 = vmatpush3.bf16.msra.mxu0 %v3374_v15  ;;  %v4007_v15 = vld [vmem:[#allocation2 + $0x10] sm:$0xfc] }
  0x59   : > { %2954 = vmatmul.mubr.msk.bf16.gmra.mrb[24].mxu1 %vm353_vm1, %v3567_v25  ;;  %3075 = vmatprep.subr.bf16.mxu0 %v3439_v1 }
  0x5a   : > { %2957 = vmatprep.mubr.msk.bf16.mxu1 %vm3440_vm0, %v3439_v1 }
  0x5c   : > { %3076 = vmatpush3.bf16.msra.mxu0 %v3376_v17  ;;  %v1572_v17 = vrot.slane %v3603_v44, 2 }
  0x5d   : > { %3157 = vmatprep.subr.bf16.mxu0 %v3439_v1 }
  0x5f   : > { %2998 = vmatmul.mubr.msk.bf16.gmra.mrb[28].mxu0 %vm353_vm1, %v3813_v18 }
  0x60   : > { %3001 = vmatprep.mubr.msk.bf16.mxu0 %vm3440_vm0, %v3439_v1 }
  0x61   : > { %2958 = vmatmul.mubr.msk.bf16.gmra.mrb[28].mxu1 %vm353_vm1, %v3603_v44 }
  0x62   : > { %2961 = vmatprep.mubr.msk.bf16.mxu1 %vm3440_vm0, %v3439_v1 }
  0x67   : > { %3002 = vmatmul.mubr.msk.bf16.gmra.mrb[32].mxu0 %vm353_vm1, %v3826_v26 }
  0x68   : > { %3005 = vmatprep.mubr.msk.bf16.mxu0 %vm3440_vm0, %v3439_v1 }
  0x69   : > { %2962 = vmatmul.mubr.msk.bf16.gmra.mrb[32].mxu1 %vm353_vm1, %v3634_v57 }
  0x6a   : > { %2965 = vmatprep.mubr.msk.bf16.mxu1 %vm3440_vm0, %v3439_v1 }
  0x6f   : > { %3006 = vmatmul.mubr.msk.bf16.gmra.mrb[36].mxu0 %vm353_vm1, %v3838_v30 }
  0x70   : > { %3009 = vmatprep.mubr.msk.bf16.mxu0 %vm3440_vm0, %v3439_v1 }
  0x71   : > { %2966 = vmatmul.mubr.msk.bf16.gmra.mrb[36].mxu1 %vm353_vm1, %v3561_v19  ;;  %v1578_v19 = vrot.slane %v3563_v20, 2 }
  0x72   : > { %2969 = vmatprep.mubr.msk.bf16.mxu1 %vm3440_vm0, %v3439_v1 }
  0x73   : > { %v1579_v42 = vsel %vm1568_vm5, %v1576_v37, %v1578_v19  ;;  %v1581_v46 = vsel %vm1568_vm5, %v1578_v19, %v1580_v43 }
  0x77   : > { %3010 = vmatmul.mubr.msk.bf16.gmra.mrb[40].mxu0 %vm353_vm1, %v3850_v33 }
  0x78   : > { %3013 = vmatprep.mubr.msk.bf16.mxu0 %vm3440_vm0, %v3439_v1 }
  0x79   : > { %2970 = vmatmul.mubr.msk.bf16.gmra.mrb[40].mxu1 %vm353_vm1, %v3563_v20 }
  0x7a   : > { %2973 = vmatprep.mubr.msk.bf16.mxu1 %vm3440_vm0, %v3439_v1 }
  0x7f   : > { %3014 = vmatmul.mubr.msk.bf16.gmra.mrb[44].mxu0 %vm353_vm1, %v3862_v35 }
  0x80   : > { %3017 = vmatprep.mubr.msk.bf16.mxu0 %vm3440_vm0, %v3439_v1 }
  0x81   : > { %2974 = vmatmul.mubr.msk.bf16.gmra.mrb[44].mxu1 %vm353_vm1, %v3574_v29 }
  0x82   : > { %2977 = vmatprep.mubr.msk.bf16.mxu1 %vm3440_vm0, %v3439_v1 }
  0x87   : > { %3018 = vmatmul.mubr.msk.bf16.gmra.mrb[48].mxu0 %vm353_vm1, %v3874_v36 }
  0x88   : > { %3021 = vmatprep.mubr.msk.bf16.mxu0 %vm3440_vm0, %v3439_v1 }
  0x89   : > { %2978 = vmatmul.mubr.msk.bf16.gmra.mrb[48].mxu1 %vm353_vm1, %v3620_v49 }
  0x8a   : > { %3033 = vmatprep.mubr.msk.bf16.mxu1 %vm3440_vm0, %v3439_v1 }
  0x8f   : > { %3022 = vmatmul.mubr.msk.bf16.gmra.mrb[52].mxu0 %vm353_vm1, %v3674_v11  ;;  %v3378_v11 = vld [vmem:[%s4506_s2 + $0xc0] sm:$0xff]  }
  0x90   : > { %3077 = vmatprep.mubr.msk.bf16.mxu0 %vm3440_vm0, %v3439_v1 }
  0x91   : > { %3034 = vmatmul.mubr.msk.bf16.vlgmr.msra.gmra.mrb[52].mxu1 %vm353_vm1, %v1093_v45 }
  0x92   : > { %3114 = vmatpush3.bf16.msra.mxu1 %v3377_v27  ;;  %3037 = vmatprep.mubr.msk.bf16.mxu1 %vm3440_vm0, %v3439_v1 }
  0x93   : > { %3115 = vmatprep.subr.bf16.mxu1 %v3439_v1 }
  0x96   : > { %3116 = vmatpush3.bf16.msra.mxu1 %v3379_v50 }
  0x97   : > { %3078 = vmatmul.mubr.msk.bf16.vlgmr.msra.gmra.mrb[56].mxu0 %vm353_vm1, %v1310_v51  ;;  %3117 = vmatprep.subr.bf16.mxu1 %v3439_v1 }
  0x98   : > { %3158 = vmatpush3.bf16.msra.mxu0 %v3378_v11  ;;  %3081 = vmatprep.mubr.msk.bf16.mxu0 %vm3440_vm0, %v3439_v1 }
  0x99   : > { %3038 = vmatmul.mubr.msk.bf16.gmra.mrb[56].mxu1 %vm353_vm1, %v3813_v18  ;;  %3159 = vmatprep.subr.bf16.mxu0 %v3439_v1  ;;  %v3388_v18 = vld [vmem:[%s4506_s2 + $0xe8] sm:$0xff]  }
  0x9a   : > { %3041 = vmatprep.mubr.msk.bf16.mxu1 %vm3440_vm0, %v3439_v1  ;;  %3118 = vmatpush3.bf16.msra.mxu1 %v3381_v55 }
  0x9b   : > { %3119 = vmatprep.subr.bf16.mxu1 %v3439_v1 }
  0x9c   : > { %3160 = vmatpush3.bf16.msra.mxu0 %v3380_v22 }
  0x9d   : > { %3161 = vmatprep.subr.bf16.mxu0 %v3439_v1 }
  0x9e   : > { %3120 = vmatpush3.bf16.msra.mxu1 %v3383_v58 }
  0x9f   : > { %3082 = vmatmul.mubr.msk.bf16.gmra.mrb[60].mxu0 %vm353_vm1, %v3704_v24  ;;  %3201 = vmatprep.subr.bf16.mxu1 %v3439_v1  ;;  %v1366_v24 = vshrl.u32 %v3730_v39, 16 }
  0xa0   : > { %3085 = vmatprep.mubr.msk.bf16.mxu0 %vm3440_vm0, %v3439_v1  ;;  %3162 = vmatpush3.bf16.msra.mxu0 %v3382_v59 }
  0xa1   : > { %3042 = vmatmul.mubr.msk.bf16.gmra.mrb[60].mxu1 %vm353_vm1, %v3826_v26  ;;  %3163 = vmatprep.subr.bf16.mxu0 %v3439_v1  ;;  %v3387_v26 = vld [vmem:[%s4506_s2 + $0x100] sm:$0xff]  }
  0xa2   : > { %3045 = vmatprep.mubr.msk.bf16.mxu1 %vm3440_vm0, %v3439_v1 }
  0xa4   : > { %3164 = vmatpush3.bf16.msra.mxu0 %v3384_v60  ;;  %v1583_v60 = vsel %vm1568_vm5, %v1580_v43, %v1582_v53 }
  0xa5   : > { %3245 = vmatprep.subr.bf16.mxu0 %v3439_v1 }
  0xa7   : > { %3086 = vmatmul.mubr.msk.bf16.gmra.mrb[64].mxu0 %vm353_vm1, %v3707_v23  ;;  %v1369_v23 = vshll.u32 %v3730_v39, 16 }
  0xa8   : > { %3089 = vmatprep.mubr.msk.bf16.mxu0 %vm3440_vm0, %v3439_v1 }
  0xa9   : > { %3046 = vmatmul.mubr.msk.bf16.gmra.mrb[64].mxu1 %vm353_vm1, %v3838_v30  ;;  %v3390_v30 = vld [vmem:[%s4506_s2 + $0xf0] sm:$0xff]  }
  0xaa   : > { %3049 = vmatprep.mubr.msk.bf16.mxu1 %vm3440_vm0, %v3439_v1 }
  0xaf   : > { %3090 = vmatmul.mubr.msk.bf16.gmra.mrb[68].mxu0 %vm353_vm1, %v3712_v38  ;;  %v1368_v38 = vrot.slane %v1366_v24, 1 }
  0xb0   : > { %3093 = vmatprep.mubr.msk.bf16.mxu0 %vm3440_vm0, %v3439_v1 }
  0xb1   : > { %3050 = vmatmul.mubr.msk.bf16.gmra.mrb[68].mxu1 %vm353_vm1, %v3850_v33  ;;  %v3389_v33 = vld [vmem:[%s4506_s2 + $0x108] sm:$0xff]  }
  0xb2   : > { %3053 = vmatprep.mubr.msk.bf16.mxu1 %vm3440_vm0, %v3439_v1 }
  0xb7   : > { %3094 = vmatmul.mubr.msk.bf16.gmra.mrb[72].mxu0 %vm353_vm1, %v3718_v47  ;;  %v1371_v47 = vrot.slane %v1369_v23, 2 }
  0xb8   : > { %3097 = vmatprep.mubr.msk.bf16.mxu0 %vm3440_vm0, %v3439_v1 }
  0xb9   : > { %3054 = vmatmul.mubr.msk.bf16.gmra.mrb[72].mxu1 %vm353_vm1, %v3862_v35  ;;  %v1372_v31 = vor.u32 %v1371_v47, %v1368_v38  ;;  %v1575_v35 = vsel %vm1568_vm5, %v1572_v17, %v1574_v32  ;;  %v1771_v32 = vld [vmem:[#allocation2 + $0x58] sm:$0x3] }
  0xba   : > { %3057 = vmatprep.mubr.msk.bf16.mxu1 %vm3440_vm0, %v3439_v1 }
  0xbb   : > { %v1373_v7 = vsel %vm1293_vm4, %v3747_v63, %v1372_v31  ;;  %v1570_v63 = vrot.slane %v3567_v25, 2  ;;  %v1790_v25 = vrot.slane %v4007_v15, 2 }
  0xbd   : > { %v1571_v54 = vsel %vm1568_vm5, %v1569_v12, %v1570_v63  ;;  %v1792_v21 = vsel %vm1568_vm5, %v1790_v25, %v1572_v17  ;;  %v1573_v28 = vsel %vm1568_vm5, %v1570_v63, %v1572_v17  ;;  %v1805_v63 = vrot.slane %v4120_v10, 2 }
  0xbe   : > { %v1997_v17 = vshll.u32 %v4007_v15, 16 }
  0xbf   : > { %3098 = vmatmul.mubr.msk.bf16.gmra.mrb[76].mxu0 %vm353_vm1, %v3726_v52  ;;  %v3982_v52 = vld [vmem:[#allocation2 + $0x50] sm:$0x3] }
  0xc0   : > { %3101 = vmatprep.mubr.msk.bf16.mxu0 %vm3440_vm0, %v3439_v1  ;;  %v1375_v56 = vshrl.u32 %v3982_v52, 16  ;;  %v1378_v4 = vshll.u32 %v3982_v52, 16 }
  0xc1   : > { %3058 = vmatmul.mubr.msk.bf16.gmra.mrb[76].mxu1 %vm353_vm1, %v3874_v36  ;;  %v3391_v36 = vld [vmem:[%s4506_s2 + $0x110] sm:$0xff]  }
  0xc2   : > { %3061 = vmatprep.mubr.msk.bf16.mxu1 %vm3440_vm0, %v3439_v1  ;;  %v1380_v14 = vrot.slane %v1378_v4, 2 }
  0xc7   : > { %3102 = vmatmul.mubr.msk.bf16.gmra.mrb[80].mxu0 %vm353_vm1, %v3756_v0  ;;  %v1377_v0 = vrot.slane %v1375_v56, 1 }
  0xc8   : > { %3105 = vmatprep.mubr.msk.bf16.mxu0 %vm3440_vm0, %v3439_v1 }
  0xc9   : > { %3062 = vmatmul.mubr.msk.bf16.gmra.mrb[80].mxu1 %vm353_vm1, %v3742_v61  ;;  %v1381_v61 = vor.u32 %v1380_v14, %v1377_v0 }
  0xca   : > { %3065 = vmatprep.mubr.msk.bf16.mxu1 %vm3440_vm0, %v3439_v1 }
  0xcb   : > { %v1382_v13 = vsel %vm1293_vm4, %v1372_v31, %v1381_v61  ;;  %v1584_v31 = vrot.slane %v3730_v39, 2 }
  0xcd   : > { %v1585_v0 = vsel %vm1568_vm5, %v1582_v53, %v1584_v31 }
  0xcf   : > { %3106 = vmatmul.mubr.msk.bf16.gmra.mrb[84].mxu0 %vm353_vm1, %v1373_v7 }
  0xd0   : > { %3109 = vmatprep.mubr.msk.bf16.mxu0 %vm3440_vm0, %v3439_v1 }
  0xd1   : > { %3066 = vmatmul.mubr.msk.bf16.gmra.mrb[84].mxu1 %vm353_vm1, %v1109_v8 }
  0xd2   : > { %3121 = vmatprep.mubr.msk.bf16.mxu1 %vm3440_vm0, %v3439_v1 }
  0xd7   : > { %3110 = vmatmul.mubr.msk.bf16.gmra.mrb[88].mxu0 %vm353_vm1, %v1382_v13  ;;  %v1586_v13 = vrot.slane %v3982_v52, 2 }
  0xd8   : > { %3165 = vmatprep.mubr.msk.bf16.mxu0 %vm3440_vm0, %v3439_v1 }
  0xd9   : > { %3122 = vmatmul.mubr.msk.bf16.vlgmr.msra.gmra.mrb[88].mxu1 %vm353_vm1, %v1571_v54  ;;  %v1587_v52 = vsel %vm1568_vm5, %v1584_v31, %v1586_v13 }
  0xda   : > { %3202 = vmatpush3.bf16.msra.mxu1 %v3386_v16  ;;  %3125 = vmatprep.mubr.msk.bf16.mxu1 %vm3440_vm0, %v3439_v1  ;;  %v1994_v16 = vshrl.u32 %v4007_v15, 16  ;;  %v2007_v15 = vrot.slane %v3618_v48, 3 }
  0xdb   : > { %3203 = vmatprep.subr.bf16.mxu1 %v3439_v1 }
  0xde   : > { %3204 = vmatpush3.bf16.msra.mxu1 %v3388_v18 }
  0xdf   : > { %3166 = vmatmul.mubr.msk.bf16.vlgmr.msra.gmra.mrb[92].mxu0 %vm353_vm1, %v1792_v21  ;;  %3205 = vmatprep.subr.bf16.mxu1 %v3439_v1 }
  0xe0   : > { %3246 = vmatpush3.bf16.msra.mxu0 %v3387_v26  ;;  %3169 = vmatprep.mubr.msk.bf16.mxu0 %vm3440_vm0, %v3439_v1  ;;  %v1806_v26 = vsel %vm1568_vm5, %v1584_v31, %v1805_v63 }
  0xe1   : > { %3126 = vmatmul.mubr.msk.bf16.gmra.mrb[92].mxu1 %vm353_vm1, %v1573_v28  ;;  %3247 = vmatprep.subr.bf16.mxu0 %v3439_v1 }
  0xe2   : > { %3129 = vmatprep.mubr.msk.bf16.mxu1 %vm3440_vm0, %v3439_v1  ;;  %3206 = vmatpush3.bf16.msra.mxu1 %v3390_v30 }
  0xe3   : > { %3207 = vmatprep.subr.bf16.mxu1 %v3439_v1 }
  0xe4   : > { %3248 = vmatpush3.bf16.msra.mxu0 %v3389_v33 }
  0xe5   : > { %3249 = vmatprep.subr.bf16.mxu0 %v3439_v1 }
  0xe6   : > { %3208 = vmatpush3.bf16.msra.mxu1 %v3392_v34  ;;  %v1996_v34 = vrot.slane %v1994_v16, 2 }
  0xe7   : > { %3170 = vmatmul.mubr.msk.bf16.gmra.mrb[96].mxu0 %vm353_vm1, %v1575_v35 }
  0xe8   : > { %3173 = vmatprep.mubr.msk.bf16.mxu0 %vm3440_vm0, %v3439_v1  ;;  %3250 = vmatpush3.bf16.msra.mxu0 %v3391_v36  ;;  %v2004_v36 = vrot.slane %v3656_v2, 2 }
  0xe9   : > { %3130 = vmatmul.mubr.msk.bf16.gmra.mrb[96].mxu1 %vm353_vm1, %v1575_v35  ;;  %3251 = vmatprep.subr.bf16.mxu0 %v3439_v1  ;;  %v1999_v35 = vrot.slane %v1997_v17, 3 }
  0xea   : > { %3133 = vmatprep.mubr.msk.bf16.mxu1 %vm3440_vm0, %v3439_v1 }
  0xeb   : > { %v2000_v19 = vor.u32 %v1999_v35, %v1996_v34  ;;  %v2271_v35 = vrot.slane %v3634_v57, 3 }
  0xec   : > { %3252 = vmatpush3.bf16.msra.mxu0 %v3393_v40  ;;  %v1807_v40 = vrot.slane %v1771_v32, 2 }
  0xef   : > { %3174 = vmatmul.mubr.msk.bf16.gmra.mrb[100].mxu0 %vm353_vm1, %v1577_v41 }
  0xf0   : > { %3177 = vmatprep.mubr.msk.bf16.mxu0 %vm3440_vm0, %v3439_v1 }
  0xf1   : > { %3134 = vmatmul.mubr.msk.bf16.gmra.mrb[100].mxu1 %vm353_vm1, %v1577_v41 }
  0xf2   : > { %3137 = vmatprep.mubr.msk.bf16.mxu1 %vm3440_vm0, %v3439_v1 }
  0xf7   : > { %3178 = vmatmul.mubr.msk.bf16.gmra.mrb[104].mxu0 %vm353_vm1, %v1579_v42 }
  0xf8   : > { %3181 = vmatprep.mubr.msk.bf16.mxu0 %vm3440_vm0, %v3439_v1 }
  0xf9   : > { %3138 = vmatmul.mubr.msk.bf16.gmra.mrb[104].mxu1 %vm353_vm1, %v1579_v42  ;;  %v2008_v42 = vor.u32 %v2007_v15, %v2004_v36  ;;  %v4188_v15 = vld [vmem:[#allocation2 + $0x30] sm:$0xff] }
  0xfa   : > { %v4079_v6 = vpop.f32.mrb[0].mxu0  ;;  %3141 = vmatprep.mubr.msk.bf16.mxu1 %vm3440_vm0, %v3439_v1 }
  0xfb   : > { %v2903_v20 = vpop.f32.mrb[1].mxu0 }
  0xfc   : > { %v4083_v45 = vpop.f32.mrb[2].mxu0  ;;  %v4085_v27 = vpop.f32.mrb[0].mxu1  ;;  %v1808_v20 = vsel %vm1568_vm5, %v1805_v63, %v1807_v40 }
  0xfd   : > { %v2904_v50 = vpop.f32.mrb[3].mxu0  ;;  %v2923_v51 = vpop.f32.mrb[1].mxu1 }
  0xfe   : > { %v4088_v11 = vpop.f32.mrb[2].mxu1 }
  0xff   : > { %3182 = vmatmul.mubr.msk.bf16.gmra.mrb[108].mxu0 %vm353_vm1, %v1581_v46  ;;  %v2924_v29 = vpop.f32.mrb[3].mxu1 }
 0x100   : > { %3185 = vmatprep.mubr.msk.bf16.mxu0 %vm3440_vm0, %v3439_v1  ;;  %v2256_v29 = vld [vmem:[#allocation2 + $0x10] sm:$0xf8] }
 0x101   : > { %3142 = vmatmul.mubr.msk.bf16.gmra.mrb[108].mxu1 %vm353_vm1, %v1581_v46  ;;  %v2268_v31 = vrot.slane %v2256_v29, 3 }
 0x102   : > { %v4095_v55 = vpop.f32.mrb[4].mxu0  ;;  %3145 = vmatprep.mubr.msk.bf16.mxu1 %vm3440_vm0, %v3439_v1 }
 0x103   : > { %v2907_v22 = vpop.f32.mrb[5].mxu0 }
 0x104   : > { %v4099_v58 = vpop.f32.mrb[6].mxu0  ;;  %v4101_v59 = vpop.f32.mrb[4].mxu1  ;;  %v2009_v22 = vsel %vm1992_vm6, %v2000_v19, %v2008_v42 }
 0x105   : > { %v2908_v38 = vpop.f32.mrb[7].mxu0  ;;  %v2927_v47 = vpop.f32.mrb[5].mxu1 }
 0x106   : > { %v4104_v62 = vpop.f32.mrb[6].mxu1  ;;  %v2016_v38 = vrot.slane %v3659_v3, 3  ;;  %v4169_v3 = vld [vmem:[#allocation2 + $0x28] sm:$0xff] }
 0x107   : > { %3186 = vmatmul.mubr.msk.bf16.gmra.mrb[112].mxu0 %vm353_vm1, %v1583_v60  ;;  %v2928_v49 = vpop.f32.mrb[7].mxu1 }
 0x108   : > { %3189 = vmatprep.mubr.msk.bf16.mxu0 %vm3440_vm0, %v3439_v1 }
 0x109   : > { %3146 = vmatmul.mubr.msk.bf16.gmra.mrb[112].mxu1 %vm353_vm1, %v1583_v60  ;;  %v2013_v60 = vrot.slane %v3668_v9, 2 }
 0x10a   : > { %v4111_v56 = vpop.f32.mrb[8].mxu0  ;;  %3149 = vmatprep.mubr.msk.bf16.mxu1 %vm3440_vm0, %v3439_v1 }
 0x10b   : > { %v2911_v4 = vpop.f32.mrb[9].mxu0  ;;  %v2017_v9 = vor.u32 %v2016_v38, %v2013_v60 }
 0x10c   : > { %v4115_v5 = vpop.f32.mrb[10].mxu0  ;;  %v4117_v7 = vpop.f32.mrb[8].mxu1 }
 0x10d   : > { %v2912_v14 = vpop.f32.mrb[11].mxu0  ;;  %v2931_v8 = vpop.f32.mrb[9].mxu1 }
 0x10e   : > { %v4122_v61 = vpop.f32.mrb[10].mxu1 }
 0x10f   : > { %3190 = vmatmul.mubr.msk.bf16.gmra.mrb[116].mxu0 %vm353_vm1, %v1585_v0  ;;  %v2932_v12 = vpop.f32.mrb[11].mxu1 }
 0x110   : > { %3193 = vmatprep.mubr.msk.bf16.mxu0 %vm3440_vm0, %v3439_v1 }
 0x111   : > { %3150 = vmatmul.mubr.msk.bf16.gmra.mrb[116].mxu1 %vm353_vm1, %v1585_v0  ;;  %v2023_v0 = vshll.u32 %v4169_v3, 16 }
 0x112   : > { %v4130_v54 = vpop.f32.mrb[12].mxu0  ;;  %3153 = vmatprep.mubr.msk.bf16.mxu1 %vm3440_vm0, %v3439_v1 }
 0x113   : > { %v2915_v25 = vpop.f32.mrb[13].mxu0 }
 0x114   : > { %v4136_v18 = vpop.f32.mrb[14].mxu0  ;;  %v4138_v21 = vpop.f32.mrb[12].mxu1 }
 0x115   : > { %v2916_v28 = vpop.f32.mrb[15].mxu0  ;;  %v2935_v30 = vpop.f32.mrb[13].mxu1 }
 0x116   : > { %v4142_v33 = vpop.f32.mrb[14].mxu1  ;;  %v2018_v28 = vsel %vm1992_vm6, %v2008_v42, %v2017_v9 }
 0x117   : > { %3194 = vmatmul.mubr.msk.bf16.gmra.mrb[120].mxu0 %vm353_vm1, %v1806_v26  ;;  %v2936_v37 = vpop.f32.mrb[15].mxu1 }
 0x118   : > { %3197 = vmatprep.mubr.msk.bf16.mxu0 %vm3440_vm0, %v3439_v1  ;;  %v2029_v37 = vshrl.u32 %v4188_v15, 16 }
 0x119   : > { %3154 = vmatmul.mubr.msk.bf16.gmra.mrb[120].mxu1 %vm353_vm1, %v1587_v52  ;;  %v2025_v52 = vrot.slane %v2023_v0, 3 }
 0x11a   : > { %v4150_v41 = vpop.f32.mrb[16].mxu0  ;;  %3209 = vmatprep.mubr.msk.bf16.mxu1 %vm3440_vm0, %v3439_v1 }
 0x11b   : > { %v2919_v43 = vpop.f32.mrb[17].mxu0 }
 0x11c   : > { %v779_v2 = vpop.f32.mrb[16].mxu1  ;;  %v4154_v48 = vpop.f32.mrb[18].mxu0 }
 0x11d   : > { %v780_v46 = vadd.f32 %v779_v2, %v4079_v6  ;;  %v2947_v50 = vpop.f32.mrb[17].mxu1  ;;  %v2920_v51 = vpop.f32.mrb[19].mxu0  ;;  %v2269_v6 = vrot.slane %v3603_v44, 3 }
 0x11e   : > { %v782_v53 = vpop.f32.mrb[18].mxu1 }
 0x11f   : > { %v783_v47 = vadd.f32 %v782_v53, %v4083_v45  ;;  %3198 = vmatmul.mubr.msk.bf16.gmra.mrb[124].mxu0 %vm353_vm1, %v1808_v20  ;;  %v2948_v49 = vpop.f32.mrb[19].mxu1  ;;  %v2020_v45 = vshrl.u32 %v4169_v3, 16  ;;  %v2270_v44 = vsel %vm2267_vm7, %v2268_v31, %v2269_v6  ;;  %v2272_v57 = vsel %vm2267_vm7, %v2269_v6, %v2271_v35  ;;  %v4207_v31 = vld [vmem:[#allocation2 + $0x38] sm:$0xff] }
 0x120   : > { %3253 = vmatprep.mubr.msk.bf16.mxu0 %vm3440_vm0, %v3439_v1  ;;  %v2031_v53 = vrot.slane %v2029_v37, 2  ;;  %v2038_v6 = vshrl.u32 %v4207_v31, 16 }
 0x121   : > { %3210 = vmatmul.mubr.msk.bf16.vlgmr.msra.gmra.mrb[124].mxu1 %vm353_vm1, %v2009_v22  ;;  %v2022_v30 = vrot.slane %v2020_v45, 2 }
 0x122   : > { %v974_v4 = vpop.f32.mrb[20].mxu0  ;;  %3213 = vmatprep.mubr.msk.bf16.mxu1 %vm3440_vm0, %v3439_v1 }
 0x123   : > { %v4173_v14 = vadd.f32 %v974_v4, %v780_v46  ;;  %v2991_v8 = vpop.f32.mrb[21].mxu0  ;;  %v2026_v36 = vor.u32 %v2025_v52, %v2022_v30  ;;  %v2275_v52 = vrot.slane %v4188_v15, 3 }
 0x124   : > { %v787_v12 = vpop.f32.mrb[20].mxu1  ;;  %v977_v63 = vpop.f32.mrb[22].mxu0 }
 0x125   : > { %v788_v13 = vadd.f32 %v787_v12, %v4095_v55  ;;  %v2951_v16 = vpop.f32.mrb[21].mxu1  ;;  %v4177_v17 = vadd.f32 %v977_v63, %v783_v47  ;;  %v2992_v25 = vpop.f32.mrb[23].mxu0  ;;  %v2027_v29 = vsel %vm1992_vm6, %v2017_v9, %v2026_v36  ;;  %v2273_v47 = vrot.slane %v4169_v3, 3 }
 0x126   : > { %v790_v26 = vpop.f32.mrb[22].mxu1  ;;  %v2040_v25 = vrot.slane %v2038_v6, 2 }
 0x127   : > { %v791_v32 = vadd.f32 %v790_v26, %v4099_v58  ;;  %3254 = vmatmul.mubr.msk.bf16.vlgmr.msra.gmra.mrb[128].mxu0 %vm353_vm1, %v2270_v44  ;;  %v2952_v34 = vpop.f32.mrb[23].mxu1  ;;  %v2032_v58 = vshll.u32 %v4188_v15, 16  ;;  %v2274_v3 = vsel %vm2267_vm7, %v2271_v35, %v2273_v47  ;;  %v2276_v15 = vsel %vm2267_vm7, %v2273_v47, %v2275_v52 }
 0x128   : > { %3257 = vmatprep.mubr.msk.bf16.mxu0 %vm3440_vm0, %v3439_v1  ;;  %v4226_v34 = vld [vmem:[#allocation2 + $0x40] sm:$0xff] }
 0x129   : > { %3214 = vmatmul.mubr.msk.bf16.gmra.mrb[128].mxu1 %vm353_vm1, %v2018_v28  ;;  %v2034_v22 = vrot.slane %v2032_v58, 3  ;;  %v2047_v35 = vshrl.u32 %v4226_v34, 16 }
 0x12a   : > { %v982_v55 = vpop.f32.mrb[24].mxu0  ;;  %3217 = vmatprep.mubr.msk.bf16.mxu1 %vm3440_vm0, %v3439_v1 }
 0x12b   : > { %v4192_v40 = vadd.f32 %v982_v55, %v788_v13  ;;  %v2995_v19 = vpop.f32.mrb[25].mxu0  ;;  %v2035_v49 = vor.u32 %v2034_v22, %v2031_v53  ;;  %v2277_v22 = vrot.slane %v4207_v31, 3 }
 0x12c   : > { %v795_v42 = vpop.f32.mrb[24].mxu1  ;;  %v985_v43 = vpop.f32.mrb[26].mxu0 }
 0x12d   : > { %v796_v2 = vadd.f32 %v795_v42, %v4111_v56  ;;  %v2955_v20 = vpop.f32.mrb[25].mxu1  ;;  %v4196_v46 = vadd.f32 %v985_v43, %v791_v32  ;;  %v2996_v50 = vpop.f32.mrb[27].mxu0  ;;  %v2036_v16 = vsel %vm1992_vm6, %v2026_v36, %v2035_v49 }
 0x12e   : > { %v798_v51 = vpop.f32.mrb[26].mxu1  ;;  %v2049_v50 = vrot.slane %v2047_v35, 2 }
 0x12f   : > { %v799_v60 = vadd.f32 %v798_v51, %v4115_v5  ;;  %3258 = vmatmul.mubr.msk.bf16.gmra.mrb[132].mxu0 %vm353_vm1, %v2272_v57  ;;  %v2956_v38 = vpop.f32.mrb[27].mxu1  ;;  %v2041_v5 = vshll.u32 %v4207_v31, 16 }
 0x130   : > { %3261 = vmatprep.mubr.msk.bf16.mxu0 %vm3440_vm0, %v3439_v1 }
 0x131   : > { %3218 = vmatmul.mubr.msk.bf16.gmra.mrb[132].mxu1 %vm353_vm1, %v2027_v29  ;;  %v2043_v26 = vrot.slane %v2041_v5, 3 }
 0x132   : > { %v990_v56 = vpop.f32.mrb[28].mxu0  ;;  %3221 = vmatprep.mubr.msk.bf16.mxu1 %vm3440_vm0, %v3439_v1 }
 0x133   : > { %v4211_v4 = vadd.f32 %v990_v56, %v796_v2  ;;  %v2999_v9 = vpop.f32.mrb[29].mxu0  ;;  %v2044_v32 = vor.u32 %v2043_v26, %v2040_v25 }
 0x134   : > { %v803_v45 = vpop.f32.mrb[28].mxu1  ;;  %v993_v0 = vpop.f32.mrb[30].mxu0 }
 0x135   : > { %v804_v8 = vadd.f32 %v803_v45, %v4130_v54  ;;  %v2959_v12 = vpop.f32.mrb[29].mxu1  ;;  %v4215_v63 = vadd.f32 %v993_v0, %v799_v60  ;;  %v3000_v44 = vpop.f32.mrb[31].mxu0  ;;  %v2045_v20 = vsel %vm1992_vm6, %v2035_v49, %v2044_v32  ;;  %v2278_v49 = vsel %vm2267_vm7, %v2275_v52, %v2277_v22 }
 0x136   : > { %v806_v13 = vpop.f32.mrb[30].mxu1 }
 0x137   : > { %v807_v28 = vadd.f32 %v806_v13, %v4136_v18  ;;  %3262 = vmatmul.mubr.msk.bf16.gmra.mrb[136].mxu0 %vm353_vm1, %v2274_v3  ;;  %v2960_v30 = vpop.f32.mrb[31].mxu1  ;;  %v2050_v18 = vshll.u32 %v4226_v34, 16  ;;  %v2058_v3 = vrot.slane %v1366_v24, 2 }
 0x138   : > { %3265 = vmatprep.mubr.msk.bf16.mxu0 %vm3440_vm0, %v3439_v1 }
 0x139   : > { %3222 = vmatmul.mubr.msk.bf16.gmra.mrb[136].mxu1 %vm353_vm1, %v2036_v16  ;;  %v2052_v51 = vrot.slane %v2050_v18, 3  ;;  %v2065_v16 = vshrl.u32 %v4120_v10, 16 }
 0x13a   : > { %v998_v54 = vpop.f32.mrb[32].mxu0  ;;  %3225 = vmatprep.mubr.msk.bf16.mxu1 %vm3440_vm0, %v3439_v1 }
 0x13b   : > { %v4230_v55 = vadd.f32 %v998_v54, %v804_v8  ;;  %v3003_v36 = vpop.f32.mrb[33].mxu0  ;;  %v2053_v60 = vor.u32 %v2052_v51, %v2049_v50  ;;  %v2061_v8 = vrot.slane %v1369_v23, 3  ;;  %v2068_v23 = vshll.u32 %v4120_v10, 16 }
 0x13c   : > { %v811_v37 = vpop.f32.mrb[32].mxu1  ;;  %v1001_v58 = vpop.f32.mrb[34].mxu0  ;;  %v2067_v36 = vrot.slane %v2065_v16, 2 }
 0x13d   : > { %v812_v19 = vadd.f32 %v811_v37, %v4150_v41  ;;  %v2963_v42 = vpop.f32.mrb[33].mxu1  ;;  %v4234_v43 = vadd.f32 %v1001_v58, %v807_v28  ;;  %v3004_v57 = vpop.f32.mrb[35].mxu0  ;;  %v2054_v0 = vsel %vm1992_vm6, %v2044_v32, %v2053_v60  ;;  %v2062_v24 = vor.u32 %v2061_v8, %v2058_v3 }
 0x13e   : > { %v814_v2 = vpop.f32.mrb[34].mxu1  ;;  %v2070_v37 = vrot.slane %v2068_v23, 3 }
 0x13f   : > { %v815_v29 = vadd.f32 %v814_v2, %v4154_v48  ;;  %3266 = vmatmul.mubr.msk.bf16.gmra.mrb[140].mxu0 %vm353_vm1, %v2276_v15  ;;  %v2964_v53 = vpop.f32.mrb[35].mxu1  ;;  %v2063_v18 = vsel %vm1992_vm6, %v2053_v60, %v2062_v24 }
 0x140   : > { %3269 = vmatprep.mubr.msk.bf16.mxu0 %vm3440_vm0, %v3439_v1  ;;  %v2071_v57 = vor.u32 %v2070_v37, %v2067_v36 }
 0x141   : > { %3226 = vmatmul.mubr.msk.bf16.gmra.mrb[140].mxu1 %vm353_vm1, %v2045_v20 }
 0x142   : > { %v1006_v41 = vpop.f32.mrb[36].mxu0  ;;  %3229 = vmatprep.mubr.msk.bf16.mxu1 %vm3440_vm0, %v3439_v1 }
 0x143   : > { %v4245_v38 = vadd.f32 %v1006_v41, %v812_v19  ;;  %v3007_v47 = vpop.f32.mrb[37].mxu0  ;;  %v1983_v19 = vld [vmem:[#allocation2 + $0x58] sm:$0x7] }
 0x144   : > { %v819_v56 = vpop.f32.mrb[36].mxu1  ;;  %v1009_v48 = vpop.f32.mrb[38].mxu0  ;;  %v2074_v2 = vshrl.u32 %v1983_v19, 16  ;;  %v2077_v20 = vshll.u32 %v1983_v19, 16 }
 0x145   : > { %v820_v6 = vadd.f32 %v819_v56, %v4085_v27  ;;  %v2967_v5 = vpop.f32.mrb[37].mxu1  ;;  %v4249_v9 = vadd.f32 %v1009_v48, %v815_v29  ;;  %v3008_v31 = vpop.f32.mrb[39].mxu0  ;;  %v2279_v27 = vrot.slane %v4226_v34, 3  ;;  %v2072_v56 = vsel %vm1992_vm6, %v2062_v24, %v2071_v57 }
 0x146   : > { %v822_v45 = vpop.f32.mrb[38].mxu1  ;;  %v2076_v48 = vrot.slane %v2074_v2, 2  ;;  %v2283_v31 = vrot.slane %v4120_v10, 3 }
 0x147   : > { %v823_v12 = vadd.f32 %v822_v45, %v4088_v11  ;;  %3270 = vmatmul.mubr.msk.bf16.gmra.mrb[144].mxu0 %vm353_vm1, %v2278_v49  ;;  %v2968_v44 = vpop.f32.mrb[39].mxu1  ;;  %v2280_v30 = vsel %vm2267_vm7, %v2277_v22, %v2279_v27  ;;  %v2079_v49 = vrot.slane %v2077_v20, 3 }
 0x148   : > { %3273 = vmatprep.mubr.msk.bf16.mxu0 %vm3440_vm0, %v3439_v1 }
 0x149   : > { %3230 = vmatmul.mubr.msk.bf16.gmra.mrb[144].mxu1 %vm353_vm1, %v2054_v0  ;;  %v2080_v45 = vor.u32 %v2079_v49, %v2076_v48 }
 0x14a   : > { %v1014_v13 = vpop.f32.mrb[40].mxu0  ;;  %3233 = vmatprep.mubr.msk.bf16.mxu1 %vm3440_vm0, %v3439_v1 }
 0x14b   : > { %v4266_v11 = vadd.f32 %v1014_v13, %v820_v6  ;;  %v3011_v25 = vpop.f32.mrb[41].mxu0  ;;  %v2081_v16 = vsel %vm1992_vm6, %v2071_v57, %v2080_v45 }
 0x14c   : > { %v827_v26 = vpop.f32.mrb[40].mxu1  ;;  %v1017_v28 = vpop.f32.mrb[42].mxu0 }
 0x14d   : > { %v828_v52 = vadd.f32 %v827_v26, %v4101_v59  ;;  %v2971_v54 = vpop.f32.mrb[41].mxu1  ;;  %v4270_v32 = vadd.f32 %v1017_v28, %v823_v12  ;;  %v3012_v34 = vpop.f32.mrb[43].mxu0  ;;  %v2281_v59 = vrot.slane %v3730_v39, 3  ;;  %v2285_v26 = vrot.slane %v1983_v19, 3 }
 0x14e   : > { %v830_v35 = vpop.f32.mrb[42].mxu1 }
 0x14f   : > { %v831_v58 = vadd.f32 %v830_v35, %v4104_v62  ;;  %3274 = vmatmul.mubr.msk.bf16.gmra.mrb[148].mxu0 %vm353_vm1, %v2280_v30  ;;  %v2972_v15 = vpop.f32.mrb[43].mxu1  ;;  %v2282_v53 = vsel %vm2267_vm7, %v2279_v27, %v2281_v59  ;;  %v2284_v12 = vsel %vm2267_vm7, %v2281_v59, %v2283_v31  ;;  %v2286_v34 = vsel %vm2267_vm7, %v2283_v31, %v2285_v26 }
 0x150   : > { %3277 = vmatprep.mubr.msk.bf16.mxu0 %vm3440_vm0, %v3439_v1 }
 0x151   : > { %3234 = vmatmul.mubr.msk.bf16.gmra.mrb[148].mxu1 %vm353_vm1, %v2063_v18 }
 0x152   : > { %v1022_v42 = vpop.f32.mrb[44].mxu0  ;;  %3237 = vmatprep.mubr.msk.bf16.mxu1 %vm3440_vm0, %v3439_v1 }
 0x153   : > { %v4281_v50 = vadd.f32 %v1022_v42, %v828_v52  ;;  %v3015_v62 = vpop.f32.mrb[45].mxu0 }
 0x154   : > { %v835_v51 = vpop.f32.mrb[44].mxu1  ;;  %v1025_v29 = vpop.f32.mrb[46].mxu0 }
 0x155   : > { %v836_v22 = vadd.f32 %v835_v51, %v4117_v7  ;;  %v2975_v41 = vpop.f32.mrb[45].mxu1  ;;  %v4285_v39 = vadd.f32 %v1025_v29, %v831_v58  ;;  %v3016_v60 = vpop.f32.mrb[47].mxu0 }
 0x156   : > { %v838_v47 = vpop.f32.mrb[46].mxu1 }
 0x157   : > { %v839_v6 = vadd.f32 %v838_v47, %v4122_v61  ;;  %3278 = vmatmul.mubr.msk.bf16.gmra.mrb[152].mxu0 %vm353_vm1, %v2282_v53  ;;  %v2976_v5 = vpop.f32.mrb[47].mxu1 }
 0x158   : > { %3281 = vmatprep.mubr.msk.bf16.mxu0 %vm3440_vm0, %v3439_v1 }
 0x159   : > { %3238 = vmatmul.mubr.msk.bf16.gmra.mrb[152].mxu1 %vm353_vm1, %v2072_v56 }
 0x15a   : > { %v1030_v7 = vpop.f32.mrb[48].mxu0  ;;  %3241 = vmatprep.mubr.msk.bf16.mxu1 %vm3440_vm0, %v3439_v1 }
 0x15b   : > { %v4296_v0 = vadd.f32 %v1030_v7, %v836_v22  ;;  %v3019_v3 = vpop.f32.mrb[49].mxu0 }
 0x15c   : > { %v843_v8 = vpop.f32.mrb[48].mxu1  ;;  %v1033_v61 = vpop.f32.mrb[50].mxu0 }
 0x15d   : > { %v844_v44 = vadd.f32 %v843_v8, %v4138_v21  ;;  %v2979_v27 = vpop.f32.mrb[49].mxu1  ;;  %v4300_v13 = vadd.f32 %v1033_v61, %v839_v6  ;;  %v3020_v10 = vpop.f32.mrb[51].mxu0 }
 0x15e   : > { %v846_v24 = vpop.f32.mrb[50].mxu1 }
 0x15f   : > { %v847_v23 = vadd.f32 %v846_v24, %v4142_v33  ;;  %3282 = vmatmul.mubr.msk.bf16.gmra.mrb[156].mxu0 %vm353_vm1, %v2284_v12  ;;  %v2980_v25 = vpop.f32.mrb[51].mxu1 }
 0x160   : > { %3285 = vmatprep.mubr.msk.bf16.mxu0 %vm3440_vm0, %v3439_v1 }
 0x161   : > { %3242 = vmatmul.mubr.msk.bf16.gmra.mrb[156].mxu1 %vm353_vm1, %v2081_v16 }
 0x162   : > { %v1038_v28 = vpop.f32.mrb[52].mxu0 }
 0x163   : > { %v4308_v21 = vadd.f32 %v1038_v28, %v844_v44  ;;  %v3023_v30 = vpop.f32.mrb[53].mxu0 }
 0x164   : > { %v1195_v52 = vpop.f32.mrb[52].mxu1  ;;  %v1041_v54 = vpop.f32.mrb[54].mxu0 }
 0x165   : > { %v1266_v35 = vadd.f32 %v1195_v52, %v4173_v14  ;;  %v3035_v33 = vpop.f32.mrb[53].mxu1  ;;  %v4312_v18 = vadd.f32 %v1041_v54, %v847_v23  ;;  %v3024_v36 = vpop.f32.mrb[55].mxu0 }
 0x166   : > { %v1198_v37 = vpop.f32.mrb[54].mxu1 }
 0x167   : > { %v1267_v1 = vadd.f32 %v1198_v37, %v4177_v17  ;;  %3286 = vmatmul.mubr.msk.bf16.gmra.mrb[160].mxu0 %vm353_vm1, %v2286_v34  ;;  %v3036_v58 = vpop.f32.mrb[55].mxu1 }
 0x16a   : > { %v1468_v15 = vpop.f32.mrb[56].mxu0 }
 0x16b   : > { %v4316_v19 = vadd.f32 %v1468_v15, %v1266_v35  ;;  %v3079_v59 = vpop.f32.mrb[57].mxu0 }
 0x16c   : > { %v1203_v42 = vpop.f32.mrb[56].mxu1  ;;  %v1471_v57 = vpop.f32.mrb[58].mxu0 }
 0x16d   : > { %v1268_v2 = vadd.f32 %v1203_v42, %v4192_v40  ;;  %v3039_v20 = vpop.f32.mrb[57].mxu1  ;;  %v4319_v14 = vadd.f32 %v1471_v57, %v1267_v1  ;;  %v3080_v62 = vpop.f32.mrb[59].mxu0 }
 0x16e   : > { %v1206_v51 = vpop.f32.mrb[58].mxu1 }
 0x16f   : > { %v1269_v29 = vadd.f32 %v1206_v51, %v4196_v46  ;;  %v3040_v53 = vpop.f32.mrb[59].mxu1 }
 0x172   : > { %v1476_v17 = vpop.f32.mrb[60].mxu0 }
 0x173   : > { %v4322_v22 = vadd.f32 %v1476_v17, %v1268_v2  ;;  %v3083_v41 = vpop.f32.mrb[61].mxu0 }
 0x174   : > { %v1211_v60 = vpop.f32.mrb[60].mxu1  ;;  %v1479_v47 = vpop.f32.mrb[62].mxu0 }
 0x175   : > { %v1270_v56 = vadd.f32 %v1211_v60, %v4211_v4  ;;  %v3043_v48 = vpop.f32.mrb[61].mxu1  ;;  %v4325_v49 = vadd.f32 %v1479_v47, %v1269_v29  ;;  %v3084_v40 = vpop.f32.mrb[63].mxu0 }
 0x176   : > { %v1214_v6 = vpop.f32.mrb[62].mxu1 }
 0x177   : > { %v1271_v5 = vadd.f32 %v1214_v6, %v4215_v63  ;;  %v3044_v31 = vpop.f32.mrb[63].mxu1 }
 0x17a   : > { %v1484_v7 = vpop.f32.mrb[64].mxu0 }
 0x17b   : > { %v4328_v45 = vadd.f32 %v1484_v7, %v1270_v56  ;;  %v3087_v46 = vpop.f32.mrb[65].mxu0 }
 0x17c   : > { %v1219_v3 = vpop.f32.mrb[64].mxu1  ;;  %v1487_v8 = vpop.f32.mrb[66].mxu0 }
 0x17d   : > { %v1272_v61 = vadd.f32 %v1219_v3, %v4230_v55  ;;  %v3047_v12 = vpop.f32.mrb[65].mxu1  ;;  %v4331_v44 = vadd.f32 %v1487_v8, %v1271_v5  ;;  %v3088_v4 = vpop.f32.mrb[67].mxu0 }
 0x17e   : > { %v1222_v27 = vpop.f32.mrb[66].mxu1 }
 0x17f   : > { %v1273_v10 = vadd.f32 %v1222_v27, %v4234_v43  ;;  %v3048_v24 = vpop.f32.mrb[67].mxu1 }
 0x182   : > { %v1492_v16 = vpop.f32.mrb[68].mxu0 }
 0x183   : > { %v4334_v23 = vadd.f32 %v1492_v16, %v1272_v61  ;;  %v3091_v63 = vpop.f32.mrb[69].mxu0 }
 0x184   : > { %v1227_v25 = vpop.f32.mrb[68].mxu1  ;;  %v1495_v26 = vpop.f32.mrb[70].mxu0 }
 0x185   : > { %v1274_v28 = vadd.f32 %v1227_v25, %v4245_v38  ;;  %v3051_v30 = vpop.f32.mrb[69].mxu1  ;;  %v4337_v52 = vadd.f32 %v1495_v26, %v1273_v10  ;;  %v3092_v55 = vpop.f32.mrb[71].mxu0 }
 0x186   : > { %v1230_v54 = vpop.f32.mrb[70].mxu1 }
 0x187   : > { %v1275_v34 = vadd.f32 %v1230_v54, %v4249_v9  ;;  %v3052_v35 = vpop.f32.mrb[71].mxu1 }
 0x18a   : > { %v1500_v33 = vpop.f32.mrb[72].mxu0 }
 0x18b   : > { %v4340_v36 = vadd.f32 %v1500_v33, %v1274_v28  ;;  %v3095_v43 = vpop.f32.mrb[73].mxu0 }
 0x18c   : > { %v1235_v37 = vpop.f32.mrb[72].mxu1  ;;  %v1503_v1 = vpop.f32.mrb[74].mxu0 }
 0x18d   : > { %v1276_v58 = vadd.f32 %v1235_v37, %v4266_v11  ;;  %v3055_v15 = vpop.f32.mrb[73].mxu1  ;;  %v4343_v59 = vadd.f32 %v1503_v1, %v1275_v34  ;;  %v3096_v38 = vpop.f32.mrb[75].mxu0 }
 0x18e   : > { %v1238_v42 = vpop.f32.mrb[74].mxu1 }
 0x18f   : > { %v1277_v57 = vadd.f32 %v1238_v42, %v4270_v32  ;;  %v3056_v2 = vpop.f32.mrb[75].mxu1 }
 0x192   : > { %v1508_v20 = vpop.f32.mrb[76].mxu0 }
 0x193   : > { %v4346_v62 = vadd.f32 %v1508_v20, %v1276_v58  ;;  %v3099_v9 = vpop.f32.mrb[77].mxu0 }
 0x194   : > { %v1243_v51 = vpop.f32.mrb[76].mxu1  ;;  %v1511_v29 = vpop.f32.mrb[78].mxu0 }
 0x195   : > { %v1278_v53 = vadd.f32 %v1243_v51, %v4281_v50  ;;  %v3059_v17 = vpop.f32.mrb[77].mxu1  ;;  %v4349_v41 = vadd.f32 %v1511_v29, %v1277_v57  ;;  %v3100_v11 = vpop.f32.mrb[79].mxu0 }
 0x196   : > { %v1246_v60 = vpop.f32.mrb[78].mxu1 }
 0x197   : > { %v1279_v47 = vadd.f32 %v1246_v60, %v4285_v39  ;;  %v3060_v56 = vpop.f32.mrb[79].mxu1 }
 0x19a   : > { %v1516_v48 = vpop.f32.mrb[80].mxu0 }
 0x19b   : > { %v4352_v40 = vadd.f32 %v1516_v48, %v1278_v53  ;;  %v3103_v32 = vpop.f32.mrb[81].mxu0 }
 0x19c   : > { %v1251_v6 = vpop.f32.mrb[80].mxu1  ;;  %v1519_v5 = vpop.f32.mrb[82].mxu0 }
 0x19d   : > { %v1280_v31 = vadd.f32 %v1251_v6, %v4296_v0  ;;  %v3063_v7 = vpop.f32.mrb[81].mxu1  ;;  %v4355_v46 = vadd.f32 %v1519_v5, %v1279_v47  ;;  %v3104_v50 = vpop.f32.mrb[83].mxu0 }
 0x19e   : > { %v1254_v3 = vpop.f32.mrb[82].mxu1 }
 0x19f   : > { %v1281_v8 = vadd.f32 %v1254_v3, %v4300_v13  ;;  %v3064_v61 = vpop.f32.mrb[83].mxu1 }
 0x1a2   : > { %v1524_v12 = vpop.f32.mrb[84].mxu0 }
 0x1a3   : > { %v4358_v4 = vadd.f32 %v1524_v12, %v1280_v31  ;;  %v3107_v39 = vpop.f32.mrb[85].mxu0 }
 0x1a4   : > { %v1259_v27 = vpop.f32.mrb[84].mxu1  ;;  %v1527_v10 = vpop.f32.mrb[86].mxu0 }
 0x1a5   : > { %v1282_v24 = vadd.f32 %v1259_v27, %v4308_v21  ;;  %v3067_v16 = vpop.f32.mrb[85].mxu1  ;;  %v4361_v63 = vadd.f32 %v1527_v10, %v1281_v8  ;;  %v3108_v0 = vpop.f32.mrb[87].mxu0 }
 0x1a6   : > { %v1262_v25 = vpop.f32.mrb[86].mxu1 }
 0x1a7   : > { %v1283_v26 = vadd.f32 %v1262_v25, %v4312_v18  ;;  %v3068_v28 = vpop.f32.mrb[87].mxu1 }
 0x1aa   : > { %v1532_v30 = vpop.f32.mrb[88].mxu0 }
 0x1ab   : > { %v4364_v55 = vadd.f32 %v1532_v30, %v1282_v24  ;;  %v3111_v13 = vpop.f32.mrb[89].mxu0 }
 0x1ac   : > { %v1673_v54 = vpop.f32.mrb[88].mxu1  ;;  %v1535_v34 = vpop.f32.mrb[90].mxu0 }
 0x1ad   : > { %v1744_v35 = vadd.f32 %v1673_v54, %v4316_v19  ;;  %v3123_v33 = vpop.f32.mrb[89].mxu1  ;;  %v4367_v43 = vadd.f32 %v1535_v34, %v1283_v26  ;;  %v3112_v21 = vpop.f32.mrb[91].mxu0 }
 0x1ae   : > { %v1676_v37 = vpop.f32.mrb[90].mxu1 }
 0x1af   : > { %v1745_v1 = vadd.f32 %v1676_v37, %v4319_v14  ;;  %v3124_v58 = vpop.f32.mrb[91].mxu1 }
 0x1b2   : > { %v1894_v15 = vpop.f32.mrb[92].mxu0 }
 0x1b3   : > { %v4370_v38 = vadd.f32 %v1894_v15, %v1744_v35  ;;  %v3167_v18 = vpop.f32.mrb[93].mxu0 }
 0x1b4   : > { %v1681_v42 = vpop.f32.mrb[92].mxu1  ;;  %v1897_v57 = vpop.f32.mrb[94].mxu0 }
 0x1b5   : > { %v1746_v2 = vadd.f32 %v1681_v42, %v4322_v22  ;;  %v3127_v20 = vpop.f32.mrb[93].mxu1  ;;  %v4373_v9 = vadd.f32 %v1897_v57, %v1745_v1  ;;  %v3168_v19 = vpop.f32.mrb[95].mxu0 }
 0x1b6   : > { %v1684_v51 = vpop.f32.mrb[94].mxu1 }
 0x1b7   : > { %v1747_v29 = vadd.f32 %v1684_v51, %v4325_v49  ;;  %v3128_v53 = vpop.f32.mrb[95].mxu1 }
 0x1ba   : > { %v1902_v17 = vpop.f32.mrb[96].mxu0 }
 0x1bb   : > { %v4376_v11 = vadd.f32 %v1902_v17, %v1746_v2  ;;  %v3171_v14 = vpop.f32.mrb[97].mxu0 }
 0x1bc   : > { %v1689_v60 = vpop.f32.mrb[96].mxu1  ;;  %v1905_v47 = vpop.f32.mrb[98].mxu0 }
 0x1bd   : > { %v1748_v56 = vadd.f32 %v1689_v60, %v4328_v45  ;;  %v3131_v48 = vpop.f32.mrb[97].mxu1  ;;  %v4379_v32 = vadd.f32 %v1905_v47, %v1747_v29  ;;  %v3172_v22 = vpop.f32.mrb[99].mxu0 }
 0x1be   : > { %v1692_v6 = vpop.f32.mrb[98].mxu1 }
 0x1bf   : > { %v1749_v5 = vadd.f32 %v1692_v6, %v4331_v44  ;;  %v3132_v31 = vpop.f32.mrb[99].mxu1 }
 0x1c2   : > { %v1910_v7 = vpop.f32.mrb[100].mxu0 }
 0x1c3   : > { %v4382_v50 = vadd.f32 %v1910_v7, %v1748_v56  ;;  %v3175_v49 = vpop.f32.mrb[101].mxu0 }
 0x1c4   : > { %v1697_v3 = vpop.f32.mrb[100].mxu1  ;;  %v1913_v8 = vpop.f32.mrb[102].mxu0 }
 0x1c5   : > { %v1750_v61 = vadd.f32 %v1697_v3, %v4334_v23  ;;  %v3135_v12 = vpop.f32.mrb[101].mxu1  ;;  %v4385_v39 = vadd.f32 %v1913_v8, %v1749_v5  ;;  %v3176_v45 = vpop.f32.mrb[103].mxu0 }
 0x1c6   : > { %v1700_v27 = vpop.f32.mrb[102].mxu1 }
 0x1c7   : > { %v1751_v10 = vadd.f32 %v1700_v27, %v4337_v52  ;;  %v3136_v24 = vpop.f32.mrb[103].mxu1 }
 0x1ca   : > { %v1918_v16 = vpop.f32.mrb[104].mxu0 }
 0x1cb   : > { %v4388_v0 = vadd.f32 %v1918_v16, %v1750_v61  ;;  %v3179_v44 = vpop.f32.mrb[105].mxu0 }
 0x1cc   : > { %v1705_v25 = vpop.f32.mrb[104].mxu1  ;;  %v1921_v26 = vpop.f32.mrb[106].mxu0 }
 0x1cd   : > { %v1752_v28 = vadd.f32 %v1705_v25, %v4340_v36  ;;  %v3139_v30 = vpop.f32.mrb[105].mxu1  ;;  %v4391_v13 = vadd.f32 %v1921_v26, %v1751_v10  ;;  %v3180_v23 = vpop.f32.mrb[107].mxu0 }
 0x1ce   : > { %v1708_v54 = vpop.f32.mrb[106].mxu1 }
 0x1cf   : > { %v1753_v34 = vadd.f32 %v1708_v54, %v4343_v59  ;;  %v3140_v35 = vpop.f32.mrb[107].mxu1 }
 0x1d2   : > { %v1926_v33 = vpop.f32.mrb[108].mxu0 }
 0x1d3   : > { %v4394_v21 = vadd.f32 %v1926_v33, %v1752_v28  ;;  %v3183_v52 = vpop.f32.mrb[109].mxu0 }
 0x1d4   : > { %v1713_v37 = vpop.f32.mrb[108].mxu1  ;;  %v1929_v1 = vpop.f32.mrb[110].mxu0 }
 0x1d5   : > { %v1754_v58 = vadd.f32 %v1713_v37, %v4346_v62  ;;  %v3143_v15 = vpop.f32.mrb[109].mxu1  ;;  %v4397_v18 = vadd.f32 %v1929_v1, %v1753_v34  ;;  %v3184_v36 = vpop.f32.mrb[111].mxu0 }
 0x1d6   : > { %v1716_v42 = vpop.f32.mrb[110].mxu1  ;;  %v4430_v15 = vld [vmem:[%s4507_s3] ss:$0 sm:$0xff] }
 0x1d7   : > { %v1755_v57 = vadd.f32 %v1716_v42, %v4349_v41  ;;  %v3144_v2 = vpop.f32.mrb[111].mxu1 }
 0x1da   : > { %v1934_v20 = vpop.f32.mrb[112].mxu0 }
 0x1db   : > { %v4400_v19 = vadd.f32 %v1934_v20, %v1754_v58  ;;  %v3187_v59 = vpop.f32.mrb[113].mxu0 }
 0x1dc   : > { %v1721_v51 = vpop.f32.mrb[112].mxu1  ;;  %v1937_v29 = vpop.f32.mrb[114].mxu0 }
 0x1dd   : > { %v1756_v53 = vadd.f32 %v1721_v51, %v4352_v40  ;;  %v3147_v17 = vpop.f32.mrb[113].mxu1  ;;  %v4403_v14 = vadd.f32 %v1937_v29, %v1755_v57  ;;  %v3188_v62 = vpop.f32.mrb[115].mxu0 }
 0x1de   : > { %v1724_v60 = vpop.f32.mrb[114].mxu1 }
 0x1df   : > { %v1757_v47 = vadd.f32 %v1724_v60, %v4355_v46  ;;  %v3148_v56 = vpop.f32.mrb[115].mxu1 }
 0x1e2   : > { %v1942_v48 = vpop.f32.mrb[116].mxu0 }
 0x1e3   : > { %v4406_v22 = vadd.f32 %v1942_v48, %v1756_v53  ;;  %v3191_v41 = vpop.f32.mrb[117].mxu0 }
 0x1e4   : > { %v1729_v6 = vpop.f32.mrb[116].mxu1  ;;  %v1945_v5 = vpop.f32.mrb[118].mxu0 }
 0x1e5   : > { %v1758_v31 = vadd.f32 %v1729_v6, %v4358_v4  ;;  %v3151_v7 = vpop.f32.mrb[117].mxu1  ;;  %v4409_v49 = vadd.f32 %v1945_v5, %v1757_v47  ;;  %v3192_v40 = vpop.f32.mrb[119].mxu0 }
 0x1e6   : > { %v1732_v3 = vpop.f32.mrb[118].mxu1 }
 0x1e7   : > { %v1759_v8 = vadd.f32 %v1732_v3, %v4361_v63  ;;  %v3152_v61 = vpop.f32.mrb[119].mxu1 }
 0x1ea   : > { %v1950_v12 = vpop.f32.mrb[120].mxu0 }
 0x1eb   : > { %v4412_v46 = vadd.f32 %v1950_v12, %v1758_v31  ;;  %v3195_v45 = vpop.f32.mrb[121].mxu0 }
 0x1ec   : > { %v1737_v27 = vpop.f32.mrb[120].mxu1  ;;  %v1953_v10 = vpop.f32.mrb[122].mxu0 }
 0x1ed   : > { %v1760_v24 = vadd.f32 %v1737_v27, %v4364_v55  ;;  %v3155_v4 = vpop.f32.mrb[121].mxu1  ;;  %v4415_v16 = vadd.f32 %v1953_v10, %v1759_v8  ;;  %v3196_v44 = vpop.f32.mrb[123].mxu0 }
 0x1ee   : > { %v1740_v25 = vpop.f32.mrb[122].mxu1 }
 0x1ef   : > { %v1761_v26 = vadd.f32 %v1740_v25, %v4367_v43  ;;  %v3156_v28 = vpop.f32.mrb[123].mxu1 }
 0x1f2   : > { %v1958_v63 = vpop.f32.mrb[124].mxu0 }
 0x1f3   : > { %v4419_v30 = vadd.f32 %v1958_v63, %v1760_v24  ;;  %v3199_v23 = vpop.f32.mrb[125].mxu0 }
 0x1f4   : > { %v2167_v54 = vpop.f32.mrb[124].mxu1  ;;  %v1961_v34 = vpop.f32.mrb[126].mxu0 }
 0x1f5   : > { %v2238_v35 = vadd.f32 %v2167_v54, %v4370_v38  ;;  %v3211_v55 = vpop.f32.mrb[125].mxu1  ;;  %v4424_v33 = vadd.f32 %v1961_v34, %v1761_v26  ;;  %v3200_v52 = vpop.f32.mrb[127].mxu0 }
 0x1f6   : > { %v2170_v37 = vpop.f32.mrb[126].mxu1 }
 0x1f7   : > { %v2239_v1 = vadd.f32 %v2170_v37, %v4373_v9  ;;  %v3212_v43 = vpop.f32.mrb[127].mxu1 }
 0x1fa   : > { %v2372_v58 = vpop.f32.mrb[128].mxu0 }
 0x1fb   : > { %v2443_v36 = vadd.f32 %v2372_v58, %v2238_v35  ;;  %v3255_v42 = vpop.f32.mrb[129].mxu0 }
 0x1fc   : > { %v2175_v57 = vpop.f32.mrb[128].mxu1  ;;  %v2375_v38 = vpop.f32.mrb[130].mxu0 }
 0x1fd   : > { %v2240_v2 = vadd.f32 %v2175_v57, %v4376_v11  ;;  %v2468_v20 = vadd.f32 %v4430_v15, %v2443_v36  ;;  %v3215_v59 = vpop.f32.mrb[129].mxu1  ;;  %v2444_v51 = vadd.f32 %v2375_v38, %v2239_v1  ;;  %v3256_v9 = vpop.f32.mrb[131].mxu0 }
 0x1fe   : > { %v2178_v29 = vpop.f32.mrb[130].mxu1 }
 0x1ff   : > { %v2486_v53 = vmax.f32 %v2468_v20, 0.0  ;;  %v2241_v17 = vadd.f32 %v2178_v29, %v4379_v32  ;;  %v2469_v62 = vadd.f32 %v4430_v15, %v2444_v51  ;;  %v3216_v60 = vpop.f32.mrb[131].mxu1 }
 0x201   : > { %2504 = vst [vmem:[%s4437_s13] sm:$0xff] %v2486_v53  ;;  %v2487_v11 = vmax.f32 %v2469_v62, 0.0 }
 0x202   : > { %v2380_v47 = vpop.f32.mrb[132].mxu0 }
 0x203   : > { %2505 = vst [vmem:[%s4437_s13 + $0x8] sm:$0xff] %v2487_v11  ;;  %v2445_v56 = vadd.f32 %v2380_v47, %v2240_v2  ;;  %v3259_v48 = vpop.f32.mrb[133].mxu0 }
 0x204   : > { %v2183_v41 = vpop.f32.mrb[132].mxu1  ;;  %v2383_v6 = vpop.f32.mrb[134].mxu0 }
 0x205   : > { %v2242_v5 = vadd.f32 %v2183_v41, %v4382_v50  ;;  %v2470_v31 = vadd.f32 %v4430_v15, %v2445_v56  ;;  %v3219_v7 = vpop.f32.mrb[133].mxu1  ;;  %v2446_v40 = vadd.f32 %v2383_v6, %v2241_v17  ;;  %v3260_v32 = vpop.f32.mrb[135].mxu0 }
 0x206   : > { %v2186_v3 = vpop.f32.mrb[134].mxu1 }
 0x207   : > { %v2488_v8 = vmax.f32 %v2470_v31, 0.0  ;;  %v2243_v61 = vadd.f32 %v2186_v3, %v4385_v39  ;;  %v2471_v12 = vadd.f32 %v4430_v15, %v2446_v40  ;;  %v3220_v45 = vpop.f32.mrb[135].mxu1 }
 0x209   : > { %2506 = vst [vmem:[%s4437_s13 + $0x10] sm:$0xff] %v2488_v8  ;;  %v2489_v27 = vmax.f32 %v2471_v12, 0.0 }
 0x20a   : > { %v2388_v10 = vpop.f32.mrb[136].mxu0 }
 0x20b   : > { %2507 = vst [vmem:[%s4437_s13 + $0x18] sm:$0xff] %v2489_v27  ;;  %v2447_v24 = vadd.f32 %v2388_v10, %v2242_v5  ;;  %v3263_v4 = vpop.f32.mrb[137].mxu0 }
 0x20c   : > { %v2191_v50 = vpop.f32.mrb[136].mxu1  ;;  %v2391_v44 = vpop.f32.mrb[138].mxu0 }
 0x20d   : > { %v2244_v25 = vadd.f32 %v2191_v50, %v4388_v0  ;;  %v2472_v26 = vadd.f32 %v4430_v15, %v2447_v24  ;;  %v3223_v28 = vpop.f32.mrb[137].mxu1  ;;  %v2448_v63 = vadd.f32 %v2391_v44, %v2243_v61  ;;  %v3264_v39 = vpop.f32.mrb[139].mxu0 }
 0x20e   : > { %v2194_v23 = vpop.f32.mrb[138].mxu1 }
 0x20f   : > { %v2490_v54 = vmax.f32 %v2472_v26, 0.0  ;;  %v2245_v34 = vadd.f32 %v2194_v23, %v4391_v13  ;;  %v2473_v35 = vadd.f32 %v4430_v15, %v2448_v63  ;;  %v3224_v55 = vpop.f32.mrb[139].mxu1 }
 0x211   : > { %2508 = vst [vmem:[%s4437_s13 + $0x20] sm:$0xff] %v2490_v54  ;;  %v2491_v52 = vmax.f32 %v2473_v35, 0.0 }
 0x212   : > { %v2396_v37 = vpop.f32.mrb[140].mxu0 }
 0x213   : > { %2509 = vst [vmem:[%s4437_s13 + $0x28] sm:$0xff] %v2491_v52  ;;  %v2449_v1 = vadd.f32 %v2396_v37, %v2244_v25  ;;  %v3267_v43 = vpop.f32.mrb[141].mxu0 }
 0x214   : > { %v2199_v0 = vpop.f32.mrb[140].mxu1  ;;  %v2399_v58 = vpop.f32.mrb[142].mxu0 }
 0x215   : > { %v2246_v36 = vadd.f32 %v2199_v0, %v4394_v21  ;;  %v2474_v42 = vadd.f32 %v4430_v15, %v2449_v1  ;;  %v3227_v57 = vpop.f32.mrb[141].mxu1  ;;  %v2450_v38 = vadd.f32 %v2399_v58, %v2245_v34  ;;  %v3268_v13 = vpop.f32.mrb[143].mxu0 }
 0x216   : > { %v2202_v2 = vpop.f32.mrb[142].mxu1 }
 0x217   : > { %v2492_v20 = vmax.f32 %v2474_v42, 0.0  ;;  %v2247_v59 = vadd.f32 %v2202_v2, %v4397_v18  ;;  %v2475_v51 = vadd.f32 %v4430_v15, %v2450_v38  ;;  %v3228_v9 = vpop.f32.mrb[143].mxu1 }
 0x219   : > { %2510 = vst [vmem:[%s4437_s13 + $0x30] sm:$0xff] %v2492_v20  ;;  %v2493_v29 = vmax.f32 %v2475_v51, 0.0 }
 0x21a   : > { %v2404_v53 = vpop.f32.mrb[144].mxu0 }
 0x21b   : > { %2511 = vst [vmem:[%s4437_s13 + $0x38] sm:$0xff] %v2493_v29  ;;  %v2451_v17 = vadd.f32 %v2404_v53, %v2246_v36  ;;  %v3271_v62 = vpop.f32.mrb[145].mxu0 }
 0x21c   : > { %v2207_v21 = vpop.f32.mrb[144].mxu1  ;;  %v2407_v60 = vpop.f32.mrb[146].mxu0 }
 0x21d   : > { %v2248_v11 = vadd.f32 %v2207_v21, %v4400_v19  ;;  %v2476_v47 = vadd.f32 %v4430_v15, %v2451_v17  ;;  %v3231_v56 = vpop.f32.mrb[145].mxu1  ;;  %v2452_v48 = vadd.f32 %v2407_v60, %v2247_v59  ;;  %v3272_v18 = vpop.f32.mrb[147].mxu0 }
 0x21e   : > { %v2210_v41 = vpop.f32.mrb[146].mxu1 }
 0x21f   : > { %v2494_v6 = vmax.f32 %v2476_v47, 0.0  ;;  %v2249_v5 = vadd.f32 %v2210_v41, %v4403_v14  ;;  %v2477_v31 = vadd.f32 %v4430_v15, %v2452_v48  ;;  %v3232_v7 = vpop.f32.mrb[147].mxu1 }
 0x221   : > { %2512 = vst [vmem:[%s4437_s13 + $0x40] sm:$0xff] %v2494_v6  ;;  %v2495_v40 = vmax.f32 %v2477_v31, 0.0 }
 0x222   : > { %v2412_v32 = vpop.f32.mrb[148].mxu0 }
 0x223   : > { %2513 = vst [vmem:[%s4437_s13 + $0x48] sm:$0xff] %v2495_v40  ;;  %v2453_v3 = vadd.f32 %v2412_v32, %v2248_v11  ;;  %v3275_v8 = vpop.f32.mrb[149].mxu0 }
 0x224   : > { %v2215_v19 = vpop.f32.mrb[148].mxu1  ;;  %v2415_v61 = vpop.f32.mrb[150].mxu0 }
 0x225   : > { %v2250_v12 = vadd.f32 %v2215_v19, %v4406_v22  ;;  %v2478_v45 = vadd.f32 %v4430_v15, %v2453_v3  ;;  %v3235_v27 = vpop.f32.mrb[149].mxu1  ;;  %v2454_v10 = vadd.f32 %v2415_v61, %v2249_v5  ;;  %v3276_v14 = vpop.f32.mrb[151].mxu0 }
 0x226   : > { %v2218_v24 = vpop.f32.mrb[150].mxu1 }
 0x227   : > { %v2496_v4 = vmax.f32 %v2478_v45, 0.0  ;;  %v2251_v50 = vadd.f32 %v2218_v24, %v4409_v49  ;;  %v2479_v44 = vadd.f32 %v4430_v15, %v2454_v10  ;;  %v3236_v25 = vpop.f32.mrb[151].mxu1 }
 0x229   : > { %2514 = vst [vmem:[%s4437_s13 + $0x50] sm:$0xff] %v2496_v4  ;;  %v2497_v26 = vmax.f32 %v2479_v44, 0.0 }
 0x22a   : > { %v2420_v28 = vpop.f32.mrb[152].mxu0 }
 0x22b   : > { %2515 = vst [vmem:[%s4437_s13 + $0x58] sm:$0xff] %v2497_v26  ;;  %v2455_v63 = vadd.f32 %v2420_v28, %v2250_v12  ;;  %v3279_v39 = vpop.f32.mrb[153].mxu0 }
 0x22c   : > { %v2223_v22 = vpop.f32.mrb[152].mxu1  ;;  %v2423_v23 = vpop.f32.mrb[154].mxu0 }
 0x22d   : > { %v2252_v54 = vadd.f32 %v2223_v22, %v4412_v46  ;;  %v2480_v34 = vadd.f32 %v4430_v15, %v2455_v63  ;;  %v3239_v35 = vpop.f32.mrb[153].mxu1  ;;  %v2456_v55 = vadd.f32 %v2423_v23, %v2251_v50  ;;  %v3280_v49 = vpop.f32.mrb[155].mxu0 }
 0x22e   : > { %v2226_v52 = vpop.f32.mrb[154].mxu1 }
 0x22f   : > { %v2498_v37 = vmax.f32 %v2480_v34, 0.0  ;;  %v2253_v1 = vadd.f32 %v2226_v52, %v4415_v16  ;;  %v2481_v43 = vadd.f32 %v4430_v15, %v2456_v55  ;;  %v3240_v0 = vpop.f32.mrb[155].mxu1 }
 0x231   : > { %2516 = vst [vmem:[%s4437_s13 + $0x60] sm:$0xff] %v2498_v37  ;;  %v2499_v58 = vmax.f32 %v2481_v43, 0.0 }
 0x232   : > { %v2428_v36 = vpop.f32.mrb[156].mxu0 }
 0x233   : > { %2517 = vst [vmem:[%s4437_s13 + $0x68] sm:$0xff] %v2499_v58  ;;  %v2457_v42 = vadd.f32 %v2428_v36, %v2252_v54  ;;  %v3283_v57 = vpop.f32.mrb[157].mxu0 }
 0x234   : > { %v2231_v46 = vpop.f32.mrb[156].mxu1  ;;  %v2431_v38 = vpop.f32.mrb[158].mxu0 }
 0x235   : > { %v2254_v13 = vadd.f32 %v2231_v46, %v4419_v30  ;;  %v2482_v2 = vadd.f32 %v4430_v15, %v2457_v42  ;;  %v3243_v20 = vpop.f32.mrb[157].mxu1  ;;  %v2458_v59 = vadd.f32 %v2431_v38, %v2253_v1  ;;  %v3284_v16 = vpop.f32.mrb[159].mxu0 }
 0x236   : > { %v2234_v51 = vpop.f32.mrb[158].mxu1 }
 0x237   : > { %v2500_v9 = vmax.f32 %v2482_v2, 0.0  ;;  %v2255_v29 = vadd.f32 %v2234_v51, %v4424_v33  ;;  %v2483_v53 = vadd.f32 %v4430_v15, %v2458_v59  ;;  %v3244_v17 = vpop.f32.mrb[159].mxu1 }
 0x239   : > { %2518 = vst [vmem:[%s4437_s13 + $0x70] sm:$0xff] %v2500_v9  ;;  %v2501_v62 = vmax.f32 %v2483_v53, 0.0 }
 0x23a   : > { %v2436_v21 = vpop.f32.mrb[160].mxu0 }
 0x23b   : > { %2519 = vst [vmem:[%s4437_s13 + $0x78] sm:$0xff] %v2501_v62  ;;  %v2459_v60 = vadd.f32 %v2436_v21, %v2254_v13  ;;  %v3287_v30 = vpop.f32.mrb[161].mxu0 }
 0x23c   : > { %v2439_v11 = vpop.f32.mrb[162].mxu0 }
 0x23d   : > { %v2484_v47 = vadd.f32 %v4430_v15, %v2459_v60  ;;  %v2460_v56 = vadd.f32 %v2439_v11, %v2255_v29  ;;  %v3288_v48 = vpop.f32.mrb[163].mxu0 }
 0x23f   : > { %v2502_v18 = vmax.f32 %v2484_v47, 0.0  ;;  %v2485_v41 = vadd.f32 %v4430_v15, %v2460_v56 }
 0x241   : > { %2520 = vst [vmem:[%s4437_s13 + $0x80] sm:$0xff] %v2502_v18  ;;  %v2503_v33 = vmax.f32 %v2485_v41, 0.0 }
 0x243   : > { %2521 = vst [vmem:[%s4437_s13 + $0x88] sm:$0xff] %v2503_v33 }
 0x244 PF: > { %s14_s19 = sadd.s32 1, %s3437_s19   ;;  %s4509_s15 = smov %s3429_s17 }
 0x245   : > { %p11_p9 = scmp.ge.s32.totalorder %s14_s19, 6   ;;  %s4510_s16 = smov %s3433_s18 }
 0x246   : > { %s4511_s17 = smov %s4514_s20  ;;  %s4512_s18 = smov %s4518_s21 }
 0x247   :  { %13 = sbr.rel (!%p11_p9) target bundleno = 3 (0x3), region = 69 }

</bundles_post_ra>
